<compile_context>
chip_gen: v7x
topology: tpu7x:2x2x1
jax: 0.10.0
libtpu: 0.0.40
codegen_flags: <defaults>
</compile_context>

<pallas_src>
import numpy as np
import jax
import jax.numpy as jnp
from jax.experimental import pallas as pl
from jax.experimental.pallas import tpu as pltpu

# Matmul-operand dtype. bf16 is MXU-native on v5e/v6e/v7x and halves weight
# VMEM — worthwhile at real hidden sizes. At the tiny test shape it buys
# nothing and would force a looser tolerance, so the default is f32.
MATMUL_DTYPE = jnp.float32   # set to jnp.bfloat16 for large hidden_dim

_SUBLANES = 8    # f32 sublane tile
_LANES = 128     # lane tile


def _round_up(n, m):
    return ((n + m - 1) // m) * m


def _resident_spec(shape):
    nd = len(shape)
    return pl.BlockSpec(shape, lambda i: (0,) * nd)


# ----------------------------------------------------------------------------
# Fused kernel: all LSTM layers (wavefront over time x layer) + final Linear.
# grid = (1,): single invocation, everything resident in VMEM.
# ----------------------------------------------------------------------------
def _make_fused_kernel(num_layers, seq_len, b_pad, hidden):
    n_in = 1 + 3 * num_layers + 2  # x2d, (wih_t, whh_t, bias) per layer, wfc, bfc

    def kernel(*args):
        x2d_ref = args[0]
        layer_refs = args[1:1 + 3 * num_layers]
        wfc_ref = args[1 + 3 * num_layers]
        bfc_ref = args[2 + 3 * num_layers]
        o_ref = args[n_in]
        xw_sc = args[n_in + 1]            # (T*B_pad, 4H) VMEM scratch

        H = hidden
        L = num_layers
        T = seq_len
        G = 4 * H

        # ---- Layer-0 input projection hoisted off the recurrence ----------
        # One large MXU matmul over the whole sequence (M = T*B_pad), bias
        # folded in, staged into VMEM scratch so the unrolled wavefront loop
        # reads one (B_pad, 4H) sublane-aligned slice per step instead of
        # holding the whole projection live in vregs.
        wih0_t = layer_refs[0][...]                       # (D_in, 4H)
        bias0 = layer_refs[2][...]                        # (1, 4H)
        xw_sc[...] = jnp.dot(x2d_ref[...].astype(wih0_t.dtype), wih0_t,
                             preferred_element_type=jnp.float32) + bias0

        # Per-layer biases for layers >= 1: broadcast ONCE, outside the loop.
        bias_b = [jnp.broadcast_to(layer_refs[3 * l + 2][...], (b_pad, G))
                  for l in range(1, L)]

        h = [jnp.zeros((b_pad, H), jnp.float32) for _ in range(L)]
        c = [jnp.zeros((b_pad, H), jnp.float32) for _ in range(L)]

        # ---- Wavefront (diagonal) schedule over (time, layer) -------------
        # Step s runs layer l at time t = s - l.  h_{l-1}(t) and h_l(t-1) were
        # both produced at step s-1, so all active layers in a step are
        # independent: back-to-back MXU pushes, critical path = T + L - 1
        # steps instead of T * L.
        # TODO(synk): for large seq_len switch this static unroll to a
        # lax.fori_loop (unroll=2..4) with pl.ds/pl.multiple_of indexing.
        for s in range(T + L - 1):
            new_h = list(h)
            new_c = list(c)
            for l in range(L):
                t = s - l
                if not (0 <= t < T):
                    continue
                whh_t = layer_refs[3 * l + 1][...]        # (H, 4H)
                if l == 0:
                    gates = (xw_sc[pl.ds(t * b_pad, b_pad), :]
                             + jnp.dot(h[0].astype(whh_t.dtype), whh_t,
                                       preferred_element_type=jnp.float32))
                else:
                    wih_t = layer_refs[3 * l][...]        # (H, 4H)
                    gates = (jnp.dot(h[l - 1].astype(wih_t.dtype), wih_t,
                                     preferred_element_type=jnp.float32)
                             + jnp.dot(h[l].astype(whh_t.dtype), whh_t,
                                       preferred_element_type=jnp.float32)
                             + bias_b[l - 1])
                # Full-tile transcendentals: one sigmoid + one tanh over the
                # whole (B_pad, 4H) tile, then per-gate slices.
                # PyTorch nn.LSTM gate order: [i, f, g, o].
                sg = jax.nn.sigmoid(gates)
                tg = jnp.tanh(gates)
                i_g = sg[:, 0 * H:1 * H]
                f_g = sg[:, 1 * H:2 * H]
                g_g = tg[:, 2 * H:3 * H]
                o_g = sg[:, 3 * H:4 * H]
                c_new = f_g * c[l] + i_g * g_g
                new_c[l] = c_new
                new_h[l] = o_g * jnp.tanh(c_new)
            h = new_h
            c = new_c

        # ---- Fused final Linear on the last layer's final hidden state ----
        # Output lane-dense (O padded to 128) -> unmasked full-vreg store.
        out = jnp.dot(h[L - 1].astype(wfc_ref.dtype), wfc_ref[...],
                      preferred_element_type=jnp.float32) + bfc_ref[...]
        o_ref[...] = out.astype(o_ref.dtype)

    return kernel


# ----------------------------------------------------------------------------
# Wrapper: weight prep (transposes, bias fold, padding) in plain JAX glue
# ----------------------------------------------------------------------------
def lstm_model_forward(x, params):
    """x: (B, T, input_dim) f32. Returns (B, output_dim)."""
    x = x.astype(jnp.float32)
    B, T, D = x.shape
    layers = params["lstm_layers"]
    L = len(layers)
    H = layers[0]["w_hh"].shape[1]
    O = params["fc_w"].shape[0]
    B_pad = _round_up(max(B, _SUBLANES), _SUBLANES)
    O_pad = _round_up(max(O, _LANES), _LANES)

    # Time-major, batch padded to a full sublane tile, flattened to 2-D so the
    # hoisted input projection is one aligned matmul and every per-timestep
    # slice starts at an 8-row-aligned offset.
    x_tm = jnp.transpose(x, (1, 0, 2))                          # (T, B, D)
    x_tm = jnp.pad(x_tm, ((0, 0), (0, B_pad - B), (0, 0)))      # (T, B_pad, D)
    x2d = x_tm.reshape(T * B_pad, D)

    inputs = [x2d]
    for lw in layers:
        inputs.append(jnp.transpose(lw["w_ih"]).astype(MATMUL_DTYPE))   # (D_in, 4H)
        inputs.append(jnp.transpose(lw["w_hh"]).astype(MATMUL_DTYPE))   # (H, 4H)
        inputs.append((lw["b_ih"] + lw["b_hh"]).astype(jnp.float32).reshape(1, 4 * H))
    # Lane-dense FC: zero-pad output dim to a full lane tile.
    wfc_t = jnp.transpose(params["fc_w"]).astype(MATMUL_DTYPE)          # (H, O)
    wfc_t = jnp.pad(wfc_t, ((0, 0), (0, O_pad - O)))                    # (H, O_pad)
    bfc = jnp.pad(params["fc_b"].astype(jnp.float32), (0, O_pad - O)).reshape(1, O_pad)
    inputs.append(wfc_t)
    inputs.append(bfc)

    kernel = _make_fused_kernel(L, T, B_pad, H)

    # Explicit VMEM budget (v5e default scoped limit is 16 MiB; v7x physical
    # VMEM is 64 MiB): 2x inputs+output for pipeline buffers + scratch,
    # floored at 32 MiB and capped well under physical.
    in_bytes = sum(int(np.prod(a.shape)) * a.dtype.itemsize for a in inputs)
    out_bytes = B_pad * O_pad * 4
    scratch_bytes = T * B_pad * 4 * H * 4
    vmem_limit = int(min(100 * 2**20,
                         max(32 * 2**20,
                             2 * (in_bytes + out_bytes) + scratch_bytes + (4 << 20))))

    out_padded = pl.pallas_call(
        kernel,
        out_shape=jax.ShapeDtypeStruct((B_pad, O_pad), jnp.float32),
        grid_spec=pltpu.PrefetchScalarGridSpec(
            num_scalar_prefetch=0,
            grid=(1,),   # single invocation: everything resident in VMEM
            in_specs=[_resident_spec(a.shape) for a in inputs],
            out_specs=pl.BlockSpec((B_pad, O_pad), lambda i: (0, 0)),
            scratch_shapes=[pltpu.VMEM((T * B_pad, 4 * H), jnp.float32)],
        ),
        compiler_params=pltpu.CompilerParams(
            dimension_semantics=("arbitrary",),
            vmem_limit_bytes=vmem_limit,
        ),
    )(*inputs)
    return out_padded[:B, :O]


# ----------------------------------------------------------------------------
# Pure-JAX reference (correctness check only; mirrors torch semantics)
# ----------------------------------------------------------------------------
def lstm_model_reference(x, params):
    h_seq = x.astype(jnp.float32)
    for lw in params["lstm_layers"]:
        B, T, _ = h_seq.shape
        H = lw["w_hh"].shape[1]
        h = jnp.zeros((B, H), jnp.float32)
        c = jnp.zeros((B, H), jnp.float32)
        outs = []
        for t in range(T):
            gates = (h_seq[:, t, :] @ lw["w_ih"].T + lw["b_ih"]
                     + h @ lw["w_hh"].T + lw["b_hh"])
            i_g = jax.nn.sigmoid(gates[:, 0 * H:1 * H])
            f_g = jax.nn.sigmoid(gates[:, 1 * H:2 * H])
            g_g = jnp.tanh(gates[:, 2 * H:3 * H])
            o_g = jax.nn.sigmoid(gates[:, 3 * H:4 * H])
            c = f_g * c + i_g * g_g
            h = o_g * jnp.tanh(c)
            outs.append(h)
        h_seq = jnp.stack(outs, axis=1)
    return h_seq[:, -1, :] @ params["fc_w"].T + params["fc_b"]


# ----------------------------------------------------------------------------
# Deterministic parameter init (PyTorch-style uniform(-1/sqrt(H), 1/sqrt(H)))
# ----------------------------------------------------------------------------
def init_params(key, input_dim, hidden_dim, num_layers, output_dim):
    params = {"lstm_layers": []}
    k = 1.0 / np.sqrt(hidden_dim)
    for layer in range(num_layers):
        d_in = input_dim if layer == 0 else hidden_dim
        key, k1, k2, k3, k4 = jax.random.split(key, 5)
        params["lstm_layers"].append({
            "w_ih": jax.random.uniform(k1, (4 * hidden_dim, d_in), jnp.float32, -k, k),
            "w_hh": jax.random.uniform(k2, (4 * hidden_dim, hidden_dim), jnp.float32, -k, k),
            "b_ih": jax.random.uniform(k3, (4 * hidden_dim,), jnp.float32, -k, k),
            "b_hh": jax.random.uniform(k4, (4 * hidden_dim,), jnp.float32, -k, k),
        })
    key, kf1, kf2 = jax.random.split(key, 3)
    params["fc_w"] = jax.random.uniform(kf1, (output_dim, hidden_dim), jnp.float32, -k, k)
    params["fc_b"] = jax.random.uniform(kf2, (output_dim,), jnp.float32, -k, k)
    return params


if __name__ == "__main__":
    # batch=2, seq=8, input_dim=4, hidden_dim=32, num_layers=2, output_dim=1
    B, T, INPUT_DIM, HIDDEN_DIM, NUM_LAYERS, OUTPUT_DIM = 2, 8, 4, 32, 2, 1

    key = jax.random.PRNGKey(0)
    key, kx = jax.random.split(key)
    x = jax.random.normal(kx, (B, T, INPUT_DIM), jnp.float32)

    params = init_params(key, INPUT_DIM, HIDDEN_DIM, NUM_LAYERS, OUTPUT_DIM)

    out = lstm_model_forward(x, params)
    out = jax.block_until_ready(out)

    ref = jax.block_until_ready(lstm_model_reference(x, params))

    tol = 1e-4 if MATMUL_DTYPE == jnp.float32 else 2e-2  # bf16 path needs looser check
    np.testing.assert_allclose(np.asarray(out), np.asarray(ref), rtol=tol, atol=tol)

    assert out.shape == (B, OUTPUT_DIM)
    print("KERNEL_OK")
</pallas_src>

<mosaic_0001>
module attributes {stable_mosaic.version = 11 : i64} {
  func.func @kernel(%arg0: i32, %arg1: memref<64x4xf32, #tpu.memory_space<vmem>>, %arg2: memref<4x128xf32, #tpu.memory_space<vmem>>, %arg3: memref<32x128xf32, #tpu.memory_space<vmem>>, %arg4: memref<1x128xf32, #tpu.memory_space<vmem>>, %arg5: memref<32x128xf32, #tpu.memory_space<vmem>>, %arg6: memref<32x128xf32, #tpu.memory_space<vmem>>, %arg7: memref<1x128xf32, #tpu.memory_space<vmem>>, %arg8: memref<32x128xf32, #tpu.memory_space<vmem>>, %arg9: memref<1x128xf32, #tpu.memory_space<vmem>>, %arg10: memref<8x128xf32, #tpu.memory_space<vmem>>, %arg11: memref<64x128xf32, #tpu.memory_space<vmem>>) attributes {dimension_semantics = [#tpu.dimension_semantics<arbitrary>], iteration_bounds = array<i64: 1>, scalar_prefetch = 0 : i64, scratch_operands = 1 : i64, tpu.core_type = #tpu.core_type<tc>, window_params = [{pipeline_mode = #tpu.pipeline_mode<synchronous>, transform_indices = @transform_0, window_bounds = array<i64: 64, 4>}, {pipeline_mode = #tpu.pipeline_mode<synchronous>, transform_indices = @transform_1, window_bounds = array<i64: 4, 128>}, {pipeline_mode = #tpu.pipeline_mode<synchronous>, transform_indices = @transform_2, window_bounds = array<i64: 32, 128>}, {pipeline_mode = #tpu.pipeline_mode<synchronous>, transform_indices = @transform_3, window_bounds = array<i64: 1, 128>}, {pipeline_mode = #tpu.pipeline_mode<synchronous>, transform_indices = @transform_4, window_bounds = array<i64: 32, 128>}, {pipeline_mode = #tpu.pipeline_mode<synchronous>, transform_indices = @transform_5, window_bounds = array<i64: 32, 128>}, {pipeline_mode = #tpu.pipeline_mode<synchronous>, transform_indices = @transform_6, window_bounds = array<i64: 1, 128>}, {pipeline_mode = #tpu.pipeline_mode<synchronous>, transform_indices = @transform_7, window_bounds = array<i64: 32, 128>}, {pipeline_mode = #tpu.pipeline_mode<synchronous>, transform_indices = @transform_8, window_bounds = array<i64: 1, 128>}, {pipeline_mode = #tpu.pipeline_mode<synchronous>, transform_indices = @transform_9, window_bounds = array<i64: 8, 128>}]} {
    %c0 = arith.constant 0 : index
    %c0_0 = arith.constant 0 : index
    %0 = vector.load %arg2[%c0, %c0_0] : memref<4x128xf32, #tpu.memory_space<vmem>>, vector<4x128xf32>
    %c0_1 = arith.constant 0 : index
    %c0_2 = arith.constant 0 : index
    %1 = vector.load %arg4[%c0_1, %c0_2] : memref<1x128xf32, #tpu.memory_space<vmem>>, vector<1x128xf32>
    %c0_3 = arith.constant 0 : index
    %c0_4 = arith.constant 0 : index
    %2 = vector.load %arg1[%c0_3, %c0_4] : memref<64x4xf32, #tpu.memory_space<vmem>>, vector<64x4xf32>
    %cst = arith.constant dense<0.000000e+00> : vector<64x128xf32>
    %3 = tpu.matmul %2, %0, %cst {dimension_numbers = #tpu.dot_dimension_numbers<[1], [0], [0], [1], [0, 0, 1, 1], [], []>} : vector<64x4xf32>, vector<4x128xf32>, vector<64x128xf32> -> vector<64x128xf32>
    %4 = vector.broadcast %1 : vector<1x128xf32> to vector<64x128xf32>
    %5 = arith.addf %3, %4 : vector<64x128xf32>
    %c0_5 = arith.constant 0 : index
    %c0_6 = arith.constant 0 : index
    %6 = vector.load %arg11[%c0_5, %c0_6] : memref<64x128xf32, #tpu.memory_space<vmem>>, vector<64x128xf32>
    tpu.vector_store %arg11[%c0_5, %c0_6], %5 {strides = array<i32>} : memref<64x128xf32, #tpu.memory_space<vmem>>, vector<64x128xf32>,
    %c0_7 = arith.constant 0 : index
    %c0_8 = arith.constant 0 : index
    %7 = vector.load %arg7[%c0_7, %c0_8] : memref<1x128xf32, #tpu.memory_space<vmem>>, vector<1x128xf32>
    %8 = vector.shape_cast %7 : vector<1x128xf32> to vector<1x128xf32>
    %9 = vector.broadcast %8 : vector<1x128xf32> to vector<8x128xf32>
    %cst_9 = arith.constant 0.000000e+00 : f32
    %10 = vector.broadcast %cst_9 : f32 to vector<8x32xf32>
    %cst_10 = arith.constant 0.000000e+00 : f32
    %11 = vector.broadcast %cst_10 : f32 to vector<8x32xf32>
    %cst_11 = arith.constant 0.000000e+00 : f32
    %12 = vector.broadcast %cst_11 : f32 to vector<8x32xf32>
    %cst_12 = arith.constant 0.000000e+00 : f32
    %13 = vector.broadcast %cst_12 : f32 to vector<8x32xf32>
    %c0_13 = arith.constant 0 : index
    %c0_14 = arith.constant 0 : index
    %14 = vector.load %arg3[%c0_13, %c0_14] : memref<32x128xf32, #tpu.memory_space<vmem>>, vector<32x128xf32>
    %c0_15 = arith.constant 0 : index
    %c0_16 = arith.constant 0 : index
    %15 = vector.load %arg11[%c0_15, %c0_16] : memref<64x128xf32, #tpu.memory_space<vmem>>, vector<8x128xf32>
    %cst_17 = arith.constant dense<0.000000e+00> : vector<8x128xf32>
    %16 = tpu.matmul %10, %14, %cst_17 {dimension_numbers = #tpu.dot_dimension_numbers<[1], [0], [0], [1], [0, 0, 1, 1], [], []>} : vector<8x32xf32>, vector<32x128xf32>, vector<8x128xf32> -> vector<8x128xf32>
    %17 = arith.addf %15, %16 : vector<8x128xf32>
    %18 = arith.negf %17 : vector<8x128xf32>
    %19 = math.exp %18 : vector<8x128xf32>
    %cst_18 = arith.constant 1.000000e+00 : f32
    %20 = vector.broadcast %cst_18 : f32 to vector<8x128xf32>
    %21 = arith.addf %20, %19 : vector<8x128xf32>
    %22 = arith.divf %20, %21 : vector<8x128xf32>
    %23 = math.tanh %17 : vector<8x128xf32>
    %24 = vector.extract_strided_slice %22 {offsets = [0, 0], sizes = [8, 32], strides = [1, 1]} : vector<8x128xf32> to vector<8x32xf32>
    %25 = vector.extract_strided_slice %22 {offsets = [0, 32], sizes = [8, 32], strides = [1, 1]} : vector<8x128xf32> to vector<8x32xf32>
    %26 = vector.extract_strided_slice %23 {offsets = [0, 64], sizes = [8, 32], strides = [1, 1]} : vector<8x128xf32> to vector<8x32xf32>
    %27 = vector.extract_strided_slice %22 {offsets = [0, 96], sizes = [8, 32], strides = [1, 1]} : vector<8x128xf32> to vector<8x32xf32>
    %28 = arith.mulf %25, %12 : vector<8x32xf32>
    %29 = arith.mulf %24, %26 : vector<8x32xf32>
    %30 = arith.addf %28, %29 : vector<8x32xf32>
    %31 = math.tanh %30 : vector<8x32xf32>
    %32 = arith.mulf %27, %31 : vector<8x32xf32>
    %c0_19 = arith.constant 0 : index
    %c0_20 = arith.constant 0 : index
    %33 = vector.load %arg3[%c0_19, %c0_20] : memref<32x128xf32, #tpu.memory_space<vmem>>, vector<32x128xf32>
    %c8 = arith.constant 8 : index
    %c0_21 = arith.constant 0 : index
    %34 = vector.load %arg11[%c8, %c0_21] : memref<64x128xf32, #tpu.memory_space<vmem>>, vector<8x128xf32>
    %cst_22 = arith.constant dense<0.000000e+00> : vector<8x128xf32>
    %35 = tpu.matmul %32, %33, %cst_22 {dimension_numbers = #tpu.dot_dimension_numbers<[1], [0], [0], [1], [0, 0, 1, 1], [], []>} : vector<8x32xf32>, vector<32x128xf32>, vector<8x128xf32> -> vector<8x128xf32>
    %36 = arith.addf %34, %35 : vector<8x128xf32>
    %37 = arith.negf %36 : vector<8x128xf32>
    %38 = math.exp %37 : vector<8x128xf32>
    %cst_23 = arith.constant 1.000000e+00 : f32
    %39 = vector.broadcast %cst_23 : f32 to vector<8x128xf32>
    %40 = arith.addf %39, %38 : vector<8x128xf32>
    %41 = arith.divf %39, %40 : vector<8x128xf32>
    %42 = math.tanh %36 : vector<8x128xf32>
    %43 = vector.extract_strided_slice %41 {offsets = [0, 0], sizes = [8, 32], strides = [1, 1]} : vector<8x128xf32> to vector<8x32xf32>
    %44 = vector.extract_strided_slice %41 {offsets = [0, 32], sizes = [8, 32], strides = [1, 1]} : vector<8x128xf32> to vector<8x32xf32>
    %45 = vector.extract_strided_slice %42 {offsets = [0, 64], sizes = [8, 32], strides = [1, 1]} : vector<8x128xf32> to vector<8x32xf32>
    %46 = vector.extract_strided_slice %41 {offsets = [0, 96], sizes = [8, 32], strides = [1, 1]} : vector<8x128xf32> to vector<8x32xf32>
    %47 = arith.mulf %44, %30 : vector<8x32xf32>
    %48 = arith.mulf %43, %45 : vector<8x32xf32>
    %49 = arith.addf %47, %48 : vector<8x32xf32>
    %50 = math.tanh %49 : vector<8x32xf32>
    %51 = arith.mulf %46, %50 : vector<8x32xf32>
    %c0_24 = arith.constant 0 : index
    %c0_25 = arith.constant 0 : index
    %52 = vector.load %arg6[%c0_24, %c0_25] : memref<32x128xf32, #tpu.memory_space<vmem>>, vector<32x128xf32>
    %c0_26 = arith.constant 0 : index
    %c0_27 = arith.constant 0 : index
    %53 = vector.load %arg5[%c0_26, %c0_27] : memref<32x128xf32, #tpu.memory_space<vmem>>, vector<32x128xf32>
    %cst_28 = arith.constant dense<0.000000e+00> : vector<8x128xf32>
    %54 = tpu.matmul %32, %53, %cst_28 {dimension_numbers = #tpu.dot_dimension_numbers<[1], [0], [0], [1], [0, 0, 1, 1], [], []>} : vector<8x32xf32>, vector<32x128xf32>, vector<8x128xf32> -> vector<8x128xf32>
    %cst_29 = arith.constant dense<0.000000e+00> : vector<8x128xf32>
    %55 = tpu.matmul %11, %52, %cst_29 {dimension_numbers = #tpu.dot_dimension_numbers<[1], [0], [0], [1], [0, 0, 1, 1], [], []>} : vector<8x32xf32>, vector<32x128xf32>, vector<8x128xf32> -> vector<8x128xf32>
    %56 = arith.addf %54, %55 : vector<8x128xf32>
    %57 = arith.addf %56, %9 : vector<8x128xf32>
    %58 = arith.negf %57 : vector<8x128xf32>
    %59 = math.exp %58 : vector<8x128xf32>
    %cst_30 = arith.constant 1.000000e+00 : f32
    %60 = vector.broadcast %cst_30 : f32 to vector<8x128xf32>
    %61 = arith.addf %60, %59 : vector<8x128xf32>
    %62 = arith.divf %60, %61 : vector<8x128xf32>
    %63 = math.tanh %57 : vector<8x128xf32>
    %64 = vector.extract_strided_slice %62 {offsets = [0, 0], sizes = [8, 32], strides = [1, 1]} : vector<8x128xf32> to vector<8x32xf32>
    %65 = vector.extract_strided_slice %62 {offsets = [0, 32], sizes = [8, 32], strides = [1, 1]} : vector<8x128xf32> to vector<8x32xf32>
    %66 = vector.extract_strided_slice %63 {offsets = [0, 64], sizes = [8, 32], strides = [1, 1]} : vector<8x128xf32> to vector<8x32xf32>
    %67 = vector.extract_strided_slice %62 {offsets = [0, 96], sizes = [8, 32], strides = [1, 1]} : vector<8x128xf32> to vector<8x32xf32>
    %68 = arith.mulf %65, %13 : vector<8x32xf32>
    %69 = arith.mulf %64, %66 : vector<8x32xf32>
    %70 = arith.addf %68, %69 : vector<8x32xf32>
    %71 = math.tanh %70 : vector<8x32xf32>
    %72 = arith.mulf %67, %71 : vector<8x32xf32>
    %c0_31 = arith.constant 0 : index
    %c0_32 = arith.constant 0 : index
    %73 = vector.load %arg3[%c0_31, %c0_32] : memref<32x128xf32, #tpu.memory_space<vmem>>, vector<32x128xf32>
    %c16 = arith.constant 16 : index
    %c0_33 = arith.constant 0 : index
    %74 = vector.load %arg11[%c16, %c0_33] : memref<64x128xf32, #tpu.memory_space<vmem>>, vector<8x128xf32>
    %cst_34 = arith.constant dense<0.000000e+00> : vector<8x128xf32>
    %75 = tpu.matmul %51, %73, %cst_34 {dimension_numbers = #tpu.dot_dimension_numbers<[1], [0], [0], [1], [0, 0, 1, 1], [], []>} : vector<8x32xf32>, vector<32x128xf32>, vector<8x128xf32> -> vector<8x128xf32>
    %76 = arith.addf %74, %75 : vector<8x128xf32>
    %77 = arith.negf %76 : vector<8x128xf32>
    %78 = math.exp %77 : vector<8x128xf32>
    %cst_35 = arith.constant 1.000000e+00 : f32
    %79 = vector.broadcast %cst_35 : f32 to vector<8x128xf32>
    %80 = arith.addf %79, %78 : vector<8x128xf32>
    %81 = arith.divf %79, %80 : vector<8x128xf32>
    %82 = math.tanh %76 : vector<8x128xf32>
    %83 = vector.extract_strided_slice %81 {offsets = [0, 0], sizes = [8, 32], strides = [1, 1]} : vector<8x128xf32> to vector<8x32xf32>
    %84 = vector.extract_strided_slice %81 {offsets = [0, 32], sizes = [8, 32], strides = [1, 1]} : vector<8x128xf32> to vector<8x32xf32>
    %85 = vector.extract_strided_slice %82 {offsets = [0, 64], sizes = [8, 32], strides = [1, 1]} : vector<8x128xf32> to vector<8x32xf32>
    %86 = vector.extract_strided_slice %81 {offsets = [0, 96], sizes = [8, 32], strides = [1, 1]} : vector<8x128xf32> to vector<8x32xf32>
    %87 = arith.mulf %84, %49 : vector<8x32xf32>
    %88 = arith.mulf %83, %85 : vector<8x32xf32>
    %89 = arith.addf %87, %88 : vector<8x32xf32>
    %90 = math.tanh %89 : vector<8x32xf32>
    %91 = arith.mulf %86, %90 : vector<8x32xf32>
    %c0_36 = arith.constant 0 : index
    %c0_37 = arith.constant 0 : index
    %92 = vector.load %arg6[%c0_36, %c0_37] : memref<32x128xf32, #tpu.memory_space<vmem>>, vector<32x128xf32>
    %c0_38 = arith.constant 0 : index
    %c0_39 = arith.constant 0 : index
    %93 = vector.load %arg5[%c0_38, %c0_39] : memref<32x128xf32, #tpu.memory_space<vmem>>, vector<32x128xf32>
    %cst_40 = arith.constant dense<0.000000e+00> : vector<8x128xf32>
    %94 = tpu.matmul %51, %93, %cst_40 {dimension_numbers = #tpu.dot_dimension_numbers<[1], [0], [0], [1], [0, 0, 1, 1], [], []>} : vector<8x32xf32>, vector<32x128xf32>, vector<8x128xf32> -> vector<8x128xf32>
    %cst_41 = arith.constant dense<0.000000e+00> : vector<8x128xf32>
    %95 = tpu.matmul %72, %92, %cst_41 {dimension_numbers = #tpu.dot_dimension_numbers<[1], [0], [0], [1], [0, 0, 1, 1], [], []>} : vector<8x32xf32>, vector<32x128xf32>, vector<8x128xf32> -> vector<8x128xf32>
    %96 = arith.addf %94, %95 : vector<8x128xf32>
    %97 = arith.addf %96, %9 : vector<8x128xf32>
    %98 = arith.negf %97 : vector<8x128xf32>
    %99 = math.exp %98 : vector<8x128xf32>
    %cst_42 = arith.constant 1.000000e+00 : f32
    %100 = vector.broadcast %cst_42 : f32 to vector<8x128xf32>
    %101 = arith.addf %100, %99 : vector<8x128xf32>
    %102 = arith.divf %100, %101 : vector<8x128xf32>
    %103 = math.tanh %97 : vector<8x128xf32>
    %104 = vector.extract_strided_slice %102 {offsets = [0, 0], sizes = [8, 32], strides = [1, 1]} : vector<8x128xf32> to vector<8x32xf32>
    %105 = vector.extract_strided_slice %102 {offsets = [0, 32], sizes = [8, 32], strides = [1, 1]} : vector<8x128xf32> to vector<8x32xf32>
    %106 = vector.extract_strided_slice %103 {offsets = [0, 64], sizes = [8, 32], strides = [1, 1]} : vector<8x128xf32> to vector<8x32xf32>
    %107 = vector.extract_strided_slice %102 {offsets = [0, 96], sizes = [8, 32], strides = [1, 1]} : vector<8x128xf32> to vector<8x32xf32>
    %108 = arith.mulf %105, %70 : vector<8x32xf32>
    %109 = arith.mulf %104, %106 : vector<8x32xf32>
    %110 = arith.addf %108, %109 : vector<8x32xf32>
    %111 = math.tanh %110 : vector<8x32xf32>
    %112 = arith.mulf %107, %111 : vector<8x32xf32>
    %c0_43 = arith.constant 0 : index
    %c0_44 = arith.constant 0 : index
    %113 = vector.load %arg3[%c0_43, %c0_44] : memref<32x128xf32, #tpu.memory_space<vmem>>, vector<32x128xf32>
    %c24 = arith.constant 24 : index
    %c0_45 = arith.constant 0 : index
    %114 = vector.load %arg11[%c24, %c0_45] : memref<64x128xf32, #tpu.memory_space<vmem>>, vector<8x128xf32>
    %cst_46 = arith.constant dense<0.000000e+00> : vector<8x128xf32>
    %115 = tpu.matmul %91, %113, %cst_46 {dimension_numbers = #tpu.dot_dimension_numbers<[1], [0], [0], [1], [0, 0, 1, 1], [], []>} : vector<8x32xf32>, vector<32x128xf32>, vector<8x128xf32> -> vector<8x128xf32>
    %116 = arith.addf %114, %115 : vector<8x128xf32>
    %117 = arith.negf %116 : vector<8x128xf32>
    %118 = math.exp %117 : vector<8x128xf32>
    %cst_47 = arith.constant 1.000000e+00 : f32
    %119 = vector.broadcast %cst_47 : f32 to vector<8x128xf32>
    %120 = arith.addf %119, %118 : vector<8x128xf32>
    %121 = arith.divf %119, %120 : vector<8x128xf32>
    %122 = math.tanh %116 : vector<8x128xf32>
    %123 = vector.extract_strided_slice %121 {offsets = [0, 0], sizes = [8, 32], strides = [1, 1]} : vector<8x128xf32> to vector<8x32xf32>
    %124 = vector.extract_strided_slice %121 {offsets = [0, 32], sizes = [8, 32], strides = [1, 1]} : vector<8x128xf32> to vector<8x32xf32>
    %125 = vector.extract_strided_slice %122 {offsets = [0, 64], sizes = [8, 32], strides = [1, 1]} : vector<8x128xf32> to vector<8x32xf32>
    %126 = vector.extract_strided_slice %121 {offsets = [0, 96], sizes = [8, 32], strides = [1, 1]} : vector<8x128xf32> to vector<8x32xf32>
    %127 = arith.mulf %124, %89 : vector<8x32xf32>
    %128 = arith.mulf %123, %125 : vector<8x32xf32>
    %129 = arith.addf %127, %128 : vector<8x32xf32>
    %130 = math.tanh %129 : vector<8x32xf32>
    %131 = arith.mulf %126, %130 : vector<8x32xf32>
    %c0_48 = arith.constant 0 : index
    %c0_49 = arith.constant 0 : index
    %132 = vector.load %arg6[%c0_48, %c0_49] : memref<32x128xf32, #tpu.memory_space<vmem>>, vector<32x128xf32>
    %c0_50 = arith.constant 0 : index
    %c0_51 = arith.constant 0 : index
    %133 = vector.load %arg5[%c0_50, %c0_51] : memref<32x128xf32, #tpu.memory_space<vmem>>, vector<32x128xf32>
    %cst_52 = arith.constant dense<0.000000e+00> : vector<8x128xf32>
    %134 = tpu.matmul %91, %133, %cst_52 {dimension_numbers = #tpu.dot_dimension_numbers<[1], [0], [0], [1], [0, 0, 1, 1], [], []>} : vector<8x32xf32>, vector<32x128xf32>, vector<8x128xf32> -> vector<8x128xf32>
    %cst_53 = arith.constant dense<0.000000e+00> : vector<8x128xf32>
    %135 = tpu.matmul %112, %132, %cst_53 {dimension_numbers = #tpu.dot_dimension_numbers<[1], [0], [0], [1], [0, 0, 1, 1], [], []>} : vector<8x32xf32>, vector<32x128xf32>, vector<8x128xf32> -> vector<8x128xf32>
    %136 = arith.addf %134, %135 : vector<8x128xf32>
    %137 = arith.addf %136, %9 : vector<8x128xf32>
    %138 = arith.negf %137 : vector<8x128xf32>
    %139 = math.exp %138 : vector<8x128xf32>
    %cst_54 = arith.constant 1.000000e+00 : f32
    %140 = vector.broadcast %cst_54 : f32 to vector<8x128xf32>
    %141 = arith.addf %140, %139 : vector<8x128xf32>
    %142 = arith.divf %140, %141 : vector<8x128xf32>
    %143 = math.tanh %137 : vector<8x128xf32>
    %144 = vector.extract_strided_slice %142 {offsets = [0, 0], sizes = [8, 32], strides = [1, 1]} : vector<8x128xf32> to vector<8x32xf32>
    %145 = vector.extract_strided_slice %142 {offsets = [0, 32], sizes = [8, 32], strides = [1, 1]} : vector<8x128xf32> to vector<8x32xf32>
    %146 = vector.extract_strided_slice %143 {offsets = [0, 64], sizes = [8, 32], strides = [1, 1]} : vector<8x128xf32> to vector<8x32xf32>
    %147 = vector.extract_strided_slice %142 {offsets = [0, 96], sizes = [8, 32], strides = [1, 1]} : vector<8x128xf32> to vector<8x32xf32>
    %148 = arith.mulf %145, %110 : vector<8x32xf32>
    %149 = arith.mulf %144, %146 : vector<8x32xf32>
    %150 = arith.addf %148, %149 : vector<8x32xf32>
    %151 = math.tanh %150 : vector<8x32xf32>
    %152 = arith.mulf %147, %151 : vector<8x32xf32>
    %c0_55 = arith.constant 0 : index
    %c0_56 = arith.constant 0 : index
    %153 = vector.load %arg3[%c0_55, %c0_56] : memref<32x128xf32, #tpu.memory_space<vmem>>, vector<32x128xf32>
    %c32 = arith.constant 32 : index
    %c0_57 = arith.constant 0 : index
    %154 = vector.load %arg11[%c32, %c0_57] : memref<64x128xf32, #tpu.memory_space<vmem>>, vector<8x128xf32>
    %cst_58 = arith.constant dense<0.000000e+00> : vector<8x128xf32>
    %155 = tpu.matmul %131, %153, %cst_58 {dimension_numbers = #tpu.dot_dimension_numbers<[1], [0], [0], [1], [0, 0, 1, 1], [], []>} : vector<8x32xf32>, vector<32x128xf32>, vector<8x128xf32> -> vector<8x128xf32>
    %156 = arith.addf %154, %155 : vector<8x128xf32>
    %157 = arith.negf %156 : vector<8x128xf32>
    %158 = math.exp %157 : vector<8x128xf32>
    %cst_59 = arith.constant 1.000000e+00 : f32
    %159 = vector.broadcast %cst_59 : f32 to vector<8x128xf32>
    %160 = arith.addf %159, %158 : vector<8x128xf32>
    %161 = arith.divf %159, %160 : vector<8x128xf32>
    %162 = math.tanh %156 : vector<8x128xf32>
    %163 = vector.extract_strided_slice %161 {offsets = [0, 0], sizes = [8, 32], strides = [1, 1]} : vector<8x128xf32> to vector<8x32xf32>
    %164 = vector.extract_strided_slice %161 {offsets = [0, 32], sizes = [8, 32], strides = [1, 1]} : vector<8x128xf32> to vector<8x32xf32>
    %165 = vector.extract_strided_slice %162 {offsets = [0, 64], sizes = [8, 32], strides = [1, 1]} : vector<8x128xf32> to vector<8x32xf32>
    %166 = vector.extract_strided_slice %161 {offsets = [0, 96], sizes = [8, 32], strides = [1, 1]} : vector<8x128xf32> to vector<8x32xf32>
    %167 = arith.mulf %164, %129 : vector<8x32xf32>
    %168 = arith.mulf %163, %165 : vector<8x32xf32>
    %169 = arith.addf %167, %168 : vector<8x32xf32>
    %170 = math.tanh %169 : vector<8x32xf32>
    %171 = arith.mulf %166, %170 : vector<8x32xf32>
    %c0_60 = arith.constant 0 : index
    %c0_61 = arith.constant 0 : index
    %172 = vector.load %arg6[%c0_60, %c0_61] : memref<32x128xf32, #tpu.memory_space<vmem>>, vector<32x128xf32>
    %c0_62 = arith.constant 0 : index
    %c0_63 = arith.constant 0 : index
    %173 = vector.load %arg5[%c0_62, %c0_63] : memref<32x128xf32, #tpu.memory_space<vmem>>, vector<32x128xf32>
    %cst_64 = arith.constant dense<0.000000e+00> : vector<8x128xf32>
    %174 = tpu.matmul %131, %173, %cst_64 {dimension_numbers = #tpu.dot_dimension_numbers<[1], [0], [0], [1], [0, 0, 1, 1], [], []>} : vector<8x32xf32>, vector<32x128xf32>, vector<8x128xf32> -> vector<8x128xf32>
    %cst_65 = arith.constant dense<0.000000e+00> : vector<8x128xf32>
    %175 = tpu.matmul %152, %172, %cst_65 {dimension_numbers = #tpu.dot_dimension_numbers<[1], [0], [0], [1], [0, 0, 1, 1], [], []>} : vector<8x32xf32>, vector<32x128xf32>, vector<8x128xf32> -> vector<8x128xf32>
    %176 = arith.addf %174, %175 : vector<8x128xf32>
    %177 = arith.addf %176, %9 : vector<8x128xf32>
    %178 = arith.negf %177 : vector<8x128xf32>
    %179 = math.exp %178 : vector<8x128xf32>
    %cst_66 = arith.constant 1.000000e+00 : f32
    %180 = vector.broadcast %cst_66 : f32 to vector<8x128xf32>
    %181 = arith.addf %180, %179 : vector<8x128xf32>
    %182 = arith.divf %180, %181 : vector<8x128xf32>
    %183 = math.tanh %177 : vector<8x128xf32>
    %184 = vector.extract_strided_slice %182 {offsets = [0, 0], sizes = [8, 32], strides = [1, 1]} : vector<8x128xf32> to vector<8x32xf32>
    %185 = vector.extract_strided_slice %182 {offsets = [0, 32], sizes = [8, 32], strides = [1, 1]} : vector<8x128xf32> to vector<8x32xf32>
    %186 = vector.extract_strided_slice %183 {offsets = [0, 64], sizes = [8, 32], strides = [1, 1]} : vector<8x128xf32> to vector<8x32xf32>
    %187 = vector.extract_strided_slice %182 {offsets = [0, 96], sizes = [8, 32], strides = [1, 1]} : vector<8x128xf32> to vector<8x32xf32>
    %188 = arith.mulf %185, %150 : vector<8x32xf32>
    %189 = arith.mulf %184, %186 : vector<8x32xf32>
    %190 = arith.addf %188, %189 : vector<8x32xf32>
    %191 = math.tanh %190 : vector<8x32xf32>
    %192 = arith.mulf %187, %191 : vector<8x32xf32>
    %c0_67 = arith.constant 0 : index
    %c0_68 = arith.constant 0 : index
    %193 = vector.load %arg3[%c0_67, %c0_68] : memref<32x128xf32, #tpu.memory_space<vmem>>, vector<32x128xf32>
    %c40 = arith.constant 40 : index
    %c0_69 = arith.constant 0 : index
    %194 = vector.load %arg11[%c40, %c0_69] : memref<64x128xf32, #tpu.memory_space<vmem>>, vector<8x128xf32>
    %cst_70 = arith.constant dense<0.000000e+00> : vector<8x128xf32>
    %195 = tpu.matmul %171, %193, %cst_70 {dimension_numbers = #tpu.dot_dimension_numbers<[1], [0], [0], [1], [0, 0, 1, 1], [], []>} : vector<8x32xf32>, vector<32x128xf32>, vector<8x128xf32> -> vector<8x128xf32>
    %196 = arith.addf %194, %195 : vector<8x128xf32>
    %197 = arith.negf %196 : vector<8x128xf32>
    %198 = math.exp %197 : vector<8x128xf32>
    %cst_71 = arith.constant 1.000000e+00 : f32
    %199 = vector.broadcast %cst_71 : f32 to vector<8x128xf32>
    %200 = arith.addf %199, %198 : vector<8x128xf32>
    %201 = arith.divf %199, %200 : vector<8x128xf32>
    %202 = math.tanh %196 : vector<8x128xf32>
    %203 = vector.extract_strided_slice %201 {offsets = [0, 0], sizes = [8, 32], strides = [1, 1]} : vector<8x128xf32> to vector<8x32xf32>
    %204 = vector.extract_strided_slice %201 {offsets = [0, 32], sizes = [8, 32], strides = [1, 1]} : vector<8x128xf32> to vector<8x32xf32>
    %205 = vector.extract_strided_slice %202 {offsets = [0, 64], sizes = [8, 32], strides = [1, 1]} : vector<8x128xf32> to vector<8x32xf32>
    %206 = vector.extract_strided_slice %201 {offsets = [0, 96], sizes = [8, 32], strides = [1, 1]} : vector<8x128xf32> to vector<8x32xf32>
    %207 = arith.mulf %204, %169 : vector<8x32xf32>
    %208 = arith.mulf %203, %205 : vector<8x32xf32>
    %209 = arith.addf %207, %208 : vector<8x32xf32>
    %210 = math.tanh %209 : vector<8x32xf32>
    %211 = arith.mulf %206, %210 : vector<8x32xf32>
    %c0_72 = arith.constant 0 : index
    %c0_73 = arith.constant 0 : index
    %212 = vector.load %arg6[%c0_72, %c0_73] : memref<32x128xf32, #tpu.memory_space<vmem>>, vector<32x128xf32>
    %c0_74 = arith.constant 0 : index
    %c0_75 = arith.constant 0 : index
    %213 = vector.load %arg5[%c0_74, %c0_75] : memref<32x128xf32, #tpu.memory_space<vmem>>, vector<32x128xf32>
    %cst_76 = arith.constant dense<0.000000e+00> : vector<8x128xf32>
    %214 = tpu.matmul %171, %213, %cst_76 {dimension_numbers = #tpu.dot_dimension_numbers<[1], [0], [0], [1], [0, 0, 1, 1], [], []>} : vector<8x32xf32>, vector<32x128xf32>, vector<8x128xf32> -> vector<8x128xf32>
    %cst_77 = arith.constant dense<0.000000e+00> : vector<8x128xf32>
    %215 = tpu.matmul %192, %212, %cst_77 {dimension_numbers = #tpu.dot_dimension_numbers<[1], [0], [0], [1], [0, 0, 1, 1], [], []>} : vector<8x32xf32>, vector<32x128xf32>, vector<8x128xf32> -> vector<8x128xf32>
    %216 = arith.addf %214, %215 : vector<8x128xf32>
    %217 = arith.addf %216, %9 : vector<8x128xf32>
    %218 = arith.negf %217 : vector<8x128xf32>
    %219 = math.exp %218 : vector<8x128xf32>
    %cst_78 = arith.constant 1.000000e+00 : f32
    %220 = vector.broadcast %cst_78 : f32 to vector<8x128xf32>
    %221 = arith.addf %220, %219 : vector<8x128xf32>
    %222 = arith.divf %220, %221 : vector<8x128xf32>
    %223 = math.tanh %217 : vector<8x128xf32>
    %224 = vector.extract_strided_slice %222 {offsets = [0, 0], sizes = [8, 32], strides = [1, 1]} : vector<8x128xf32> to vector<8x32xf32>
    %225 = vector.extract_strided_slice %222 {offsets = [0, 32], sizes = [8, 32], strides = [1, 1]} : vector<8x128xf32> to vector<8x32xf32>
    %226 = vector.extract_strided_slice %223 {offsets = [0, 64], sizes = [8, 32], strides = [1, 1]} : vector<8x128xf32> to vector<8x32xf32>
    %227 = vector.extract_strided_slice %222 {offsets = [0, 96], sizes = [8, 32], strides = [1, 1]} : vector<8x128xf32> to vector<8x32xf32>
    %228 = arith.mulf %225, %190 : vector<8x32xf32>
    %229 = arith.mulf %224, %226 : vector<8x32xf32>
    %230 = arith.addf %228, %229 : vector<8x32xf32>
    %231 = math.tanh %230 : vector<8x32xf32>
    %232 = arith.mulf %227, %231 : vector<8x32xf32>
    %c0_79 = arith.constant 0 : index
    %c0_80 = arith.constant 0 : index
    %233 = vector.load %arg3[%c0_79, %c0_80] : memref<32x128xf32, #tpu.memory_space<vmem>>, vector<32x128xf32>
    %c48 = arith.constant 48 : index
    %c0_81 = arith.constant 0 : index
    %234 = vector.load %arg11[%c48, %c0_81] : memref<64x128xf32, #tpu.memory_space<vmem>>, vector<8x128xf32>
    %cst_82 = arith.constant dense<0.000000e+00> : vector<8x128xf32>
    %235 = tpu.matmul %211, %233, %cst_82 {dimension_numbers = #tpu.dot_dimension_numbers<[1], [0], [0], [1], [0, 0, 1, 1], [], []>} : vector<8x32xf32>, vector<32x128xf32>, vector<8x128xf32> -> vector<8x128xf32>
    %236 = arith.addf %234, %235 : vector<8x128xf32>
    %237 = arith.negf %236 : vector<8x128xf32>
    %238 = math.exp %237 : vector<8x128xf32>
    %cst_83 = arith.constant 1.000000e+00 : f32
    %239 = vector.broadcast %cst_83 : f32 to vector<8x128xf32>
    %240 = arith.addf %239, %238 : vector<8x128xf32>
    %241 = arith.divf %239, %240 : vector<8x128xf32>
    %242 = math.tanh %236 : vector<8x128xf32>
    %243 = vector.extract_strided_slice %241 {offsets = [0, 0], sizes = [8, 32], strides = [1, 1]} : vector<8x128xf32> to vector<8x32xf32>
    %244 = vector.extract_strided_slice %241 {offsets = [0, 32], sizes = [8, 32], strides = [1, 1]} : vector<8x128xf32> to vector<8x32xf32>
    %245 = vector.extract_strided_slice %242 {offsets = [0, 64], sizes = [8, 32], strides = [1, 1]} : vector<8x128xf32> to vector<8x32xf32>
    %246 = vector.extract_strided_slice %241 {offsets = [0, 96], sizes = [8, 32], strides = [1, 1]} : vector<8x128xf32> to vector<8x32xf32>
    %247 = arith.mulf %244, %209 : vector<8x32xf32>
    %248 = arith.mulf %243, %245 : vector<8x32xf32>
    %249 = arith.addf %247, %248 : vector<8x32xf32>
    %250 = math.tanh %249 : vector<8x32xf32>
    %251 = arith.mulf %246, %250 : vector<8x32xf32>
    %c0_84 = arith.constant 0 : index
    %c0_85 = arith.constant 0 : index
    %252 = vector.load %arg6[%c0_84, %c0_85] : memref<32x128xf32, #tpu.memory_space<vmem>>, vector<32x128xf32>
    %c0_86 = arith.constant 0 : index
    %c0_87 = arith.constant 0 : index
    %253 = vector.load %arg5[%c0_86, %c0_87] : memref<32x128xf32, #tpu.memory_space<vmem>>, vector<32x128xf32>
    %cst_88 = arith.constant dense<0.000000e+00> : vector<8x128xf32>
    %254 = tpu.matmul %211, %253, %cst_88 {dimension_numbers = #tpu.dot_dimension_numbers<[1], [0], [0], [1], [0, 0, 1, 1], [], []>} : vector<8x32xf32>, vector<32x128xf32>, vector<8x128xf32> -> vector<8x128xf32>
    %cst_89 = arith.constant dense<0.000000e+00> : vector<8x128xf32>
    %255 = tpu.matmul %232, %252, %cst_89 {dimension_numbers = #tpu.dot_dimension_numbers<[1], [0], [0], [1], [0, 0, 1, 1], [], []>} : vector<8x32xf32>, vector<32x128xf32>, vector<8x128xf32> -> vector<8x128xf32>
    %256 = arith.addf %254, %255 : vector<8x128xf32>
    %257 = arith.addf %256, %9 : vector<8x128xf32>
    %258 = arith.negf %257 : vector<8x128xf32>
    %259 = math.exp %258 : vector<8x128xf32>
    %cst_90 = arith.constant 1.000000e+00 : f32
    %260 = vector.broadcast %cst_90 : f32 to vector<8x128xf32>
    %261 = arith.addf %260, %259 : vector<8x128xf32>
    %262 = arith.divf %260, %261 : vector<8x128xf32>
    %263 = math.tanh %257 : vector<8x128xf32>
    %264 = vector.extract_strided_slice %262 {offsets = [0, 0], sizes = [8, 32], strides = [1, 1]} : vector<8x128xf32> to vector<8x32xf32>
    %265 = vector.extract_strided_slice %262 {offsets = [0, 32], sizes = [8, 32], strides = [1, 1]} : vector<8x128xf32> to vector<8x32xf32>
    %266 = vector.extract_strided_slice %263 {offsets = [0, 64], sizes = [8, 32], strides = [1, 1]} : vector<8x128xf32> to vector<8x32xf32>
    %267 = vector.extract_strided_slice %262 {offsets = [0, 96], sizes = [8, 32], strides = [1, 1]} : vector<8x128xf32> to vector<8x32xf32>
    %268 = arith.mulf %265, %230 : vector<8x32xf32>
    %269 = arith.mulf %264, %266 : vector<8x32xf32>
    %270 = arith.addf %268, %269 : vector<8x32xf32>
    %271 = math.tanh %270 : vector<8x32xf32>
    %272 = arith.mulf %267, %271 : vector<8x32xf32>
    %c0_91 = arith.constant 0 : index
    %c0_92 = arith.constant 0 : index
    %273 = vector.load %arg3[%c0_91, %c0_92] : memref<32x128xf32, #tpu.memory_space<vmem>>, vector<32x128xf32>
    %c56 = arith.constant 56 : index
    %c0_93 = arith.constant 0 : index
    %274 = vector.load %arg11[%c56, %c0_93] : memref<64x128xf32, #tpu.memory_space<vmem>>, vector<8x128xf32>
    %cst_94 = arith.constant dense<0.000000e+00> : vector<8x128xf32>
    %275 = tpu.matmul %251, %273, %cst_94 {dimension_numbers = #tpu.dot_dimension_numbers<[1], [0], [0], [1], [0, 0, 1, 1], [], []>} : vector<8x32xf32>, vector<32x128xf32>, vector<8x128xf32> -> vector<8x128xf32>
    %276 = arith.addf %274, %275 : vector<8x128xf32>
    %277 = arith.negf %276 : vector<8x128xf32>
    %278 = math.exp %277 : vector<8x128xf32>
    %cst_95 = arith.constant 1.000000e+00 : f32
    %279 = vector.broadcast %cst_95 : f32 to vector<8x128xf32>
    %280 = arith.addf %279, %278 : vector<8x128xf32>
    %281 = arith.divf %279, %280 : vector<8x128xf32>
    %282 = math.tanh %276 : vector<8x128xf32>
    %283 = vector.extract_strided_slice %281 {offsets = [0, 0], sizes = [8, 32], strides = [1, 1]} : vector<8x128xf32> to vector<8x32xf32>
    %284 = vector.extract_strided_slice %281 {offsets = [0, 32], sizes = [8, 32], strides = [1, 1]} : vector<8x128xf32> to vector<8x32xf32>
    %285 = vector.extract_strided_slice %282 {offsets = [0, 64], sizes = [8, 32], strides = [1, 1]} : vector<8x128xf32> to vector<8x32xf32>
    %286 = vector.extract_strided_slice %281 {offsets = [0, 96], sizes = [8, 32], strides = [1, 1]} : vector<8x128xf32> to vector<8x32xf32>
    %287 = arith.mulf %284, %249 : vector<8x32xf32>
    %288 = arith.mulf %283, %285 : vector<8x32xf32>
    %289 = arith.addf %287, %288 : vector<8x32xf32>
    %290 = math.tanh %289 : vector<8x32xf32>
    %291 = arith.mulf %286, %290 : vector<8x32xf32>
    %c0_96 = arith.constant 0 : index
    %c0_97 = arith.constant 0 : index
    %292 = vector.load %arg6[%c0_96, %c0_97] : memref<32x128xf32, #tpu.memory_space<vmem>>, vector<32x128xf32>
    %c0_98 = arith.constant 0 : index
    %c0_99 = arith.constant 0 : index
    %293 = vector.load %arg5[%c0_98, %c0_99] : memref<32x128xf32, #tpu.memory_space<vmem>>, vector<32x128xf32>
    %cst_100 = arith.constant dense<0.000000e+00> : vector<8x128xf32>
    %294 = tpu.matmul %251, %293, %cst_100 {dimension_numbers = #tpu.dot_dimension_numbers<[1], [0], [0], [1], [0, 0, 1, 1], [], []>} : vector<8x32xf32>, vector<32x128xf32>, vector<8x128xf32> -> vector<8x128xf32>
    %cst_101 = arith.constant dense<0.000000e+00> : vector<8x128xf32>
    %295 = tpu.matmul %272, %292, %cst_101 {dimension_numbers = #tpu.dot_dimension_numbers<[1], [0], [0], [1], [0, 0, 1, 1], [], []>} : vector<8x32xf32>, vector<32x128xf32>, vector<8x128xf32> -> vector<8x128xf32>
    %296 = arith.addf %294, %295 : vector<8x128xf32>
    %297 = arith.addf %296, %9 : vector<8x128xf32>
    %298 = arith.negf %297 : vector<8x128xf32>
    %299 = math.exp %298 : vector<8x128xf32>
    %cst_102 = arith.constant 1.000000e+00 : f32
    %300 = vector.broadcast %cst_102 : f32 to vector<8x128xf32>
    %301 = arith.addf %300, %299 : vector<8x128xf32>
    %302 = arith.divf %300, %301 : vector<8x128xf32>
    %303 = math.tanh %297 : vector<8x128xf32>
    %304 = vector.extract_strided_slice %302 {offsets = [0, 0], sizes = [8, 32], strides = [1, 1]} : vector<8x128xf32> to vector<8x32xf32>
    %305 = vector.extract_strided_slice %302 {offsets = [0, 32], sizes = [8, 32], strides = [1, 1]} : vector<8x128xf32> to vector<8x32xf32>
    %306 = vector.extract_strided_slice %303 {offsets = [0, 64], sizes = [8, 32], strides = [1, 1]} : vector<8x128xf32> to vector<8x32xf32>
    %307 = vector.extract_strided_slice %302 {offsets = [0, 96], sizes = [8, 32], strides = [1, 1]} : vector<8x128xf32> to vector<8x32xf32>
    %308 = arith.mulf %305, %270 : vector<8x32xf32>
    %309 = arith.mulf %304, %306 : vector<8x32xf32>
    %310 = arith.addf %308, %309 : vector<8x32xf32>
    %311 = math.tanh %310 : vector<8x32xf32>
    %312 = arith.mulf %307, %311 : vector<8x32xf32>
    %c0_103 = arith.constant 0 : index
    %c0_104 = arith.constant 0 : index
    %313 = vector.load %arg6[%c0_103, %c0_104] : memref<32x128xf32, #tpu.memory_space<vmem>>, vector<32x128xf32>
    %c0_105 = arith.constant 0 : index
    %c0_106 = arith.constant 0 : index
    %314 = vector.load %arg5[%c0_105, %c0_106] : memref<32x128xf32, #tpu.memory_space<vmem>>, vector<32x128xf32>
    %cst_107 = arith.constant dense<0.000000e+00> : vector<8x128xf32>
    %315 = tpu.matmul %291, %314, %cst_107 {dimension_numbers = #tpu.dot_dimension_numbers<[1], [0], [0], [1], [0, 0, 1, 1], [], []>} : vector<8x32xf32>, vector<32x128xf32>, vector<8x128xf32> -> vector<8x128xf32>
    %cst_108 = arith.constant dense<0.000000e+00> : vector<8x128xf32>
    %316 = tpu.matmul %312, %313, %cst_108 {dimension_numbers = #tpu.dot_dimension_numbers<[1], [0], [0], [1], [0, 0, 1, 1], [], []>} : vector<8x32xf32>, vector<32x128xf32>, vector<8x128xf32> -> vector<8x128xf32>
    %317 = arith.addf %315, %316 : vector<8x128xf32>
    %318 = arith.addf %317, %9 : vector<8x128xf32>
    %319 = arith.negf %318 : vector<8x128xf32>
    %320 = math.exp %319 : vector<8x128xf32>
    %cst_109 = arith.constant 1.000000e+00 : f32
    %321 = vector.broadcast %cst_109 : f32 to vector<8x128xf32>
    %322 = arith.addf %321, %320 : vector<8x128xf32>
    %323 = arith.divf %321, %322 : vector<8x128xf32>
    %324 = math.tanh %318 : vector<8x128xf32>
    %325 = vector.extract_strided_slice %323 {offsets = [0, 0], sizes = [8, 32], strides = [1, 1]} : vector<8x128xf32> to vector<8x32xf32>
    %326 = vector.extract_strided_slice %323 {offsets = [0, 32], sizes = [8, 32], strides = [1, 1]} : vector<8x128xf32> to vector<8x32xf32>
    %327 = vector.extract_strided_slice %324 {offsets = [0, 64], sizes = [8, 32], strides = [1, 1]} : vector<8x128xf32> to vector<8x32xf32>
    %328 = vector.extract_strided_slice %323 {offsets = [0, 96], sizes = [8, 32], strides = [1, 1]} : vector<8x128xf32> to vector<8x32xf32>
    %329 = arith.mulf %326, %310 : vector<8x32xf32>
    %330 = arith.mulf %325, %327 : vector<8x32xf32>
    %331 = arith.addf %329, %330 : vector<8x32xf32>
    %332 = math.tanh %331 : vector<8x32xf32>
    %333 = arith.mulf %328, %332 : vector<8x32xf32>
    %c0_110 = arith.constant 0 : index
    %c0_111 = arith.constant 0 : index
    %334 = vector.load %arg8[%c0_110, %c0_111] : memref<32x128xf32, #tpu.memory_space<vmem>>, vector<32x128xf32>
    %cst_112 = arith.constant dense<0.000000e+00> : vector<8x128xf32>
    %335 = tpu.matmul %333, %334, %cst_112 {dimension_numbers = #tpu.dot_dimension_numbers<[1], [0], [0], [1], [0, 0, 1, 1], [], []>} : vector<8x32xf32>, vector<32x128xf32>, vector<8x128xf32> -> vector<8x128xf32>
    %c0_113 = arith.constant 0 : index
    %c0_114 = arith.constant 0 : index
    %336 = vector.load %arg9[%c0_113, %c0_114] : memref<1x128xf32, #tpu.memory_space<vmem>>, vector<1x128xf32>
    %337 = vector.broadcast %336 : vector<1x128xf32> to vector<8x128xf32>
    %338 = arith.addf %335, %337 : vector<8x128xf32>
    %c0_115 = arith.constant 0 : index
    %c0_116 = arith.constant 0 : index
    %339 = vector.load %arg10[%c0_115, %c0_116] : memref<8x128xf32, #tpu.memory_space<vmem>>, vector<8x128xf32>
    tpu.vector_store %arg10[%c0_115, %c0_116], %338 {strides = array<i32>} : memref<8x128xf32, #tpu.memory_space<vmem>>, vector<8x128xf32>,
    return
  }
  func.func @transform_0(%arg0: i32) -> (i32, i32) {
    %c0_i32 = arith.constant 0 : i32
    %c0_i32_0 = arith.constant 0 : i32
    %c0_i32_1 = arith.constant 0 : i32
    return %c0_i32, %c0_i32_0 : i32, i32
  }
  func.func @transform_1(%arg0: i32) -> (i32, i32) {
    %c0_i32 = arith.constant 0 : i32
    %c0_i32_0 = arith.constant 0 : i32
    %c0_i32_1 = arith.constant 0 : i32
    return %c0_i32, %c0_i32_0 : i32, i32
  }
  func.func @transform_2(%arg0: i32) -> (i32, i32) {
    %c0_i32 = arith.constant 0 : i32
    %c0_i32_0 = arith.constant 0 : i32
    %c0_i32_1 = arith.constant 0 : i32
    return %c0_i32, %c0_i32_0 : i32, i32
  }
  func.func @transform_3(%arg0: i32) -> (i32, i32) {
    %c0_i32 = arith.constant 0 : i32
    %c0_i32_0 = arith.constant 0 : i32
    %c0_i32_1 = arith.constant 0 : i32
    return %c0_i32, %c0_i32_0 : i32, i32
  }
  func.func @transform_4(%arg0: i32) -> (i32, i32) {
    %c0_i32 = arith.constant 0 : i32
    %c0_i32_0 = arith.constant 0 : i32
    %c0_i32_1 = arith.constant 0 : i32
    return %c0_i32, %c0_i32_0 : i32, i32
  }
  func.func @transform_5(%arg0: i32) -> (i32, i32) {
    %c0_i32 = arith.constant 0 : i32
    %c0_i32_0 = arith.constant 0 : i32
    %c0_i32_1 = arith.constant 0 : i32
    return %c0_i32, %c0_i32_0 : i32, i32
  }
  func.func @transform_6(%arg0: i32) -> (i32, i32) {
    %c0_i32 = arith.constant 0 : i32
    %c0_i32_0 = arith.constant 0 : i32
    %c0_i32_1 = arith.constant 0 : i32
    return %c0_i32, %c0_i32_0 : i32, i32
  }
  func.func @transform_7(%arg0: i32) -> (i32, i32) {
    %c0_i32 = arith.constant 0 : i32
    %c0_i32_0 = arith.constant 0 : i32
    %c0_i32_1 = arith.constant 0 : i32
    return %c0_i32, %c0_i32_0 : i32, i32
  }
  func.func @transform_8(%arg0: i32) -> (i32, i32) {
    %c0_i32 = arith.constant 0 : i32
    %c0_i32_0 = arith.constant 0 : i32
    %c0_i32_1 = arith.constant 0 : i32
    return %c0_i32, %c0_i32_0 : i32, i32
  }
  func.func @transform_9(%arg0: i32) -> (i32, i32) {
    %c0_i32 = arith.constant 0 : i32
    %c0_i32_0 = arith.constant 0 : i32
    %c0_i32_1 = arith.constant 0 : i32
    return %c0_i32, %c0_i32_0 : i32, i32
  }
}

</mosaic_0001>

<bundles_post_ra>
// kernel: tpu_custom_call.1
= control target key start
LH: loop header
LB: loop body
LE: loop exit
PB: predicated region body
PF: predicated region fallthrough
CT: control target
= control target key end

     0   :  { %14 = vsyncpa [#allocation4], 0  ;;  %s3851_s0 = inlined_call_operand.vmem [shape: f32[64,4], index: 0, kind: input, shape index: {}]   ;;  %s3852_s1 = inlined_call_operand.vmem [shape: f32[4,128], index: 1, kind: input, shape index: {}]   ;;  %s3853_s2 = inlined_call_operand.vmem [shape: f32[32,128], index: 2, kind: input, shape index: {}]   ;;  %s3854_s3 = inlined_call_operand.vmem [shape: f32[1,128], index: 3, kind: input, shape index: {}]   ;;  %s3855_s4 = inlined_call_operand.vmem [shape: f32[32,128], index: 4, kind: input, shape index: {}]   ;;  %s3856_s5 = inlined_call_operand.hbm [shape: f32[32,128], index: 5, kind: input, shape index: {}]   ;;  %s3857_s6 = inlined_call_operand.vmem [shape: f32[1,128], index: 6, kind: input, shape index: {}]   ;;  %s3858_s7 = inlined_call_operand.hbm [shape: f32[32,128], index: 7, kind: input, shape index: {}]   ;;  %s3859_s8 = inlined_call_operand.vmem [shape: f32[1,128], index: 8, kind: input, shape index: {}]   ;;  %s3860_s9 = inlined_call_operand.hbm [shape: f32[8,128], index: 9, kind: output, shape index: {}]  }
   0x1   :  { %15 = vsyncpa [#allocation7], 0 }
   0x2   :  { %16 = vsyncpa [#allocation5], 0  ;;  %s3343_s30 = smov [#allocation3]   ;;  %s3271_s13 = scalar_lea.hbm %s3856_s5, 512 }
   0x3   :  { %s32_s10 = sshll.u32 %s3343_s30, 4  ;;  %p3272_p0 = scmp.ne.s32.totalorder %s3856_s5, %s3271_s13  ;;  %s33_s10 = int_to_ptr.vmem [resolvable:$true] %s32_s10 }
   0x4   :  { %p3275_p1 = scmp.lt.u32.totalorder %s3271_s13, %s3856_s5 }
   0x6   :  { %p3277_p2 = pnand %p3275_p1, %p3272_p0 }
   0x8   :  { %3280 = shalt.err (!%p3277_p2)
}
   0x9   :  { %s3281_s18 = scalar_lea.vmem %s33_s10, 512  ;;  %p3286_p4 = scmp.lt.s32.totalorder %s33_s10, %s33_s10 }
   0xa   :  { %p3282_p3 = scmp.ne.s32.totalorder %s33_s10, %s3281_s18  ;;  %p3287_p5 = scmp.lt.s32.totalorder %s3281_s18, %s3281_s18 }
   0xc   :  { %p3288_p6 = por %p3287_p5, %p3286_p4 }
   0xe   :  { %p3289_p7 = pnand %p3288_p6, %p3282_p3 }
  0x10   :  { %3292 = shalt.err (!%p3289_p7)
}
  0x11   :  { %s3344_s19 = smov 128   ;;  %s3345_s20 = smov 8  }
  0x12   :  { %38 = dma.hbm_to_vmem [thread:$0]  %s3856_s5, 512, %s33_s10, [#allocation4], %s3344_s19, %s3344_s19, %s3345_s20  }
  0x13   :  { %s3346_s23 = smov [#allocation6]   ;;  %s3293_s27 = scalar_lea.hbm %s3858_s7, 512 }
  0x14   :  { %s46_s24 = sshll.u32 %s3346_s23, 4  ;;  %p3294_p8 = scmp.ne.s32.totalorder %s3858_s7, %s3293_s27  ;;  %s47_s24 = int_to_ptr.vmem [resolvable:$true] %s46_s24 }
  0x15   :  { %p3297_p9 = scmp.lt.u32.totalorder %s3293_s27, %s3858_s7 }
  0x17   :  { %p3299_p10 = pnand %p3297_p9, %p3294_p8 }
  0x19   :  { %3302 = shalt.err (!%p3299_p10)
}
  0x1a   :  { %s3303_s12 = scalar_lea.vmem %s47_s24, 512  ;;  %p3308_p12 = scmp.lt.s32.totalorder %s47_s24, %s47_s24 }
  0x1b   :  { %p3304_p11 = scmp.ne.s32.totalorder %s47_s24, %s3303_s12  ;;  %p3309_p13 = scmp.lt.s32.totalorder %s3303_s12, %s3303_s12 }
  0x1d   :  { %p3310_p0 = por %p3309_p13, %p3308_p12 }
  0x1f   :  { %p3311_p1 = pnand %p3310_p0, %p3304_p11 }
  0x21   :  { %3314 = shalt.err (!%p3311_p1)
}
  0x22   :  { %52 = dma.hbm_to_vmem [thread:$0]  %s3858_s7, 512, %s47_s24, [#allocation7], %s3344_s19, %s3344_s19, %s3345_s20  }
  0x23   :  { %3337 = dma.done.wait [#allocation4], 512  }
  0x24   :  { %3338 = vsyncadd [#allocation4], 4294966784 }
  0x25   :  { %3339 = dma.done.wait [#allocation7], 512  }
  0x26   :  { %3340 = vsyncadd [#allocation7], 4294966784  ;;  %v3347_v0 = vmov 0.0|0.0   ;;  %vm3348_vm0 = vmmov 0   ;;  %v3349_v1 = vmov 0.0   ;;  %vm102_vm1 = vcmask 1043456  }
  0x27   :  { %2982 = vmatprep.subr.bf16.mxu1 %v3347_v0  ;;  %2715 = vmatprep.mubr.msk.f32.mxu1 %vm3348_vm0, %v3349_v1  ;;  %vm77_vm2 = vcmask 31744   ;;  %v226_v2 = vld [vmem:[%s3853_s2] sm:$0xff]  ;;  %v227_v3 = vld [vmem:[%s3853_s2 + $0x8] sm:$0xff]  ;;  %v228_v8 = vld [vmem:[%s3853_s2 + $0x10] sm:$0xff]  ;;  %s3350_s26 = smov 64   ;;  %s3351_s27 = smov 32  }
  0x28   :  { %v61_v4 = vld [vmem:[%s3852_s1] sm:$0xf]  ;;  %v3439_v5 = vpack.c.bf16 %v227_v3, %v226_v2  ;;  %v64_v7 = vld [vmem:[%s3851_s0 + $0x8] sm:$0xff]  ;;  %v229_v9 = vld [vmem:[%s3853_s2 + $0x18] sm:$0xff]  ;;  %vm231_vm3 = vcmask 261120   ;;  %s3352_s25 = smov [#allocation8]  }
  0x29   :  { %2693 = vmatprep.subr.msk.mxu0 %vm102_vm1, %v61_v4  ;;  %v63_v6 = vld [vmem:[%s3851_s0] sm:$0xff]  ;;  %v3456_v10 = vpack.c.bf16 %v229_v9, %v228_v8  ;;  %v432_v29 = vld [vmem:[#allocation3 + $0x8] sm:$0xff]  ;;  %v65_v30 = vld [vmem:[%s3851_s0 + $0x10] sm:$0xff]  ;;  %s2498_s28 = sshll.u32 %s3352_s25, 4  ;;  %s2499_s28 = int_to_ptr.vmem [resolvable:$true] %s2498_s28 }
  0x2a   :  { %2694 = vmatpush3.msk.msra.mxu0 %vm102_vm1, %v61_v4  ;;  %2695 = vmatprep.mubr.msk.f32.mxu0 %vm77_vm2, %v63_v6  ;;  %v3474_v12 = vld [vmem:[%s3854_s3] ss:$0 sm:$0xff]  ;;  %v66_v32 = vld [vmem:[%s3851_s0 + $0x18] sm:$0xff]  ;;  %v433_v34 = vld [vmem:[#allocation3 + $0x10] sm:$0xff]  ;;  %s3315_s29 = scalar_lea.vmem %s2499_s28, 128  ;;  %p3320_p3 = scmp.lt.s32.totalorder %s2499_s28, %s2499_s28 }
  0x2b   :  { %2984 = vmatpush3.bf16.msra.mxu1 %v3439_v5  ;;  %2696 = vmatmul.mubr.msk.f32.vlgmr.msra.gmra.mrb[0].mxu0 %vm77_vm2, %v64_v7  ;;  %v431_v28 = vld [vmem:[#allocation3] sm:$0xff]  ;;  %v434_v35 = vld [vmem:[#allocation3 + $0x18] sm:$0xff]  ;;  %v68_v36 = vld [vmem:[%s3851_s0 + $0x28] sm:$0xff]  ;;  %p3316_p2 = scmp.ne.s32.totalorder %s2499_s28, %s3315_s29  ;;  %p3321_p4 = scmp.lt.s32.totalorder %s3315_s29, %s3315_s29 }
  0x2c   :  { %2985 = vmatprep.subr.bf16.mxu1 %v3347_v0  ;;  %2994 = vmatprep.subr.bf16.mxu0 %v3347_v0  ;;  %v3485_v31 = vpack.c.bf16 %v432_v29, %v431_v28  ;;  %v67_v33 = vld [vmem:[%s3851_s0 + $0x20] sm:$0xff]  ;;  %v3500_v37 = vpack.c.bf16 %v434_v35, %v433_v34  ;;  %v69_v39 = vld [vmem:[%s3851_s0 + $0x30] sm:$0xff]  ;;  %v70_v40 = vld [vmem:[%s3851_s0 + $0x38] sm:$0xff] }
  0x2d   :  { %2698 = vmatprep.mubr.msk.f32.mxu0 %vm77_vm2, %v65_v30  ;;  %v435_v47 = vld [vmem:[%s3855_s4] sm:$0xff]  ;;  %v436_v48 = vld [vmem:[%s3855_s4 + $0x8] sm:$0xff]  ;;  %v437_v50 = vld [vmem:[%s3855_s4 + $0x10] sm:$0xff]  ;;  %p3322_p5 = por %p3321_p4, %p3320_p3 }
  0x2e   :  { %2996 = vmatpush3.bf16.msra.mxu0 %v3485_v31  ;;  %v3539_v49 = vpack.c.bf16 %v436_v48, %v435_v47  ;;  %v438_v51 = vld [vmem:[%s3855_s4 + $0x18] sm:$0xff]  ;;  %v3572_v62 = vld [vmem:[%s3857_s6] ss:$0 sm:$0xff] }
  0x2f   :  { %2987 = vmatpush3.bf16.msra.mxu1 %v3456_v10  ;;  %2699 = vmatmul.mubr.msk.f32.gmra.mrb[2].mxu0 %vm77_vm2, %v66_v32  ;;  %v3549_v53 = vpack.c.bf16 %v438_v51, %v437_v50  ;;  %p3323_p6 = pnand %p3322_p5, %p3316_p2 }
  0x30   :  { %2988 = vmatprep.subr.bf16.mxu1 %v3347_v0  ;;  %2701 = vmatprep.mubr.msk.f32.mxu0 %vm77_vm2, %v67_v33 }
  0x31   :  { %2997 = vmatprep.subr.bf16.mxu0 %v3347_v0 }
  0x32   :  { %2716 = vmatmul.mubr.f32.vlgmr.msra.gmra.mrb[0].mxu1 %v3349_v1  ;;  %2999 = vmatpush3.bf16.msra.mxu0 %v3500_v37 }
  0x33   :  { %2990 = vmatpush3.bf16.msra.mxu1 %v3439_v5  ;;  %2726 = vmatprep.mubr.msk.f32.mxu1 %vm3348_vm0, %v3349_v1 }
  0x34   :  { %2991 = vmatprep.subr.bf16.mxu1 %v3347_v0  ;;  %2702 = vmatmul.mubr.msk.f32.gmra.mrb[4].mxu0 %vm77_vm2, %v68_v36 }
  0x35   :  { %3006 = vmatprep.subr.bf16.mxu0 %v3347_v0  ;;  %2704 = vmatprep.mubr.msk.f32.mxu0 %vm77_vm2, %v69_v39 }
  0x37   :  { %2993 = vmatpush3.bf16.msra.mxu1 %v3456_v10 }
  0x38   :  { %3000 = vmatprep.subr.bf16.mxu1 %v3347_v0  ;;  %2705 = vmatmul.mubr.msk.f32.gmra.mrb[6].mxu0 %vm77_vm2, %v70_v40 }
  0x39   :  { %2737 = vmatprep.mubr.msk.f32.mxu0 %vm3348_vm0, %v3349_v1 }
  0x3c   :  { %2738 = vmatmul.mubr.f32.vlgmr.msra.gmra.mrb[8].mxu0 %v3349_v1 }
  0x3d   :  { %3008 = vmatpush3.bf16.msra.mxu0 %v3439_v5  ;;  %2759 = vmatprep.mubr.msk.f32.mxu0 %vm3348_vm0, %v3349_v1 }
  0x3e   :  { %3009 = vmatprep.subr.bf16.mxu0 %v3347_v0 }
  0x41   :  { %3011 = vmatpush3.bf16.msra.mxu0 %v3456_v10 }
  0x42   :  { %3018 = vmatprep.subr.bf16.mxu0 %v3347_v0 }
  0xfe   :  { %v3469_v11 = vpop.f32.mrb[0].mxu0 }
  0xff   :  { %v172_v13 = vpop.f32.mrb[1].mxu0  ;;  %v178_v58 = vadd.f32 %v3469_v11, %v3474_v12 }
 0x100   :  { %v173_v14 = vadd.f32 %v3474_v12, %v172_v13 }
 0x102   :  { %v3525_v43 = vpop.f32.mrb[2].mxu0 }
 0x103   :  { %v3527_v44 = vpop.f32.mrb[3].mxu0 }
 0x105   :  { %v301_v15 = vpop.f32.mrb[0].mxu1 }
 0x106   :  { %v305_v16 = vadd.f32 %v301_v15, %v173_v14  ;;  %v2717_v17 = vpop.f32.mrb[1].mxu1 }
 0x107   :  { %v3529_v45 = vpop.f32.mrb[4].mxu0 }
 0x108   :  { %3142 = vtanh.f32 %v305_v16  ;;  %v2519_v19 = vmul.f32 -1.442695, %v305_v16  ;;  %v3531_v46 = vpop.f32.mrb[5].mxu0 }
 0x10a   :  { %3144 = vpow2.f32 %v2519_v19 }
 0x10b   :  { %v3563_v54 = vpop.f32.mrb[6].mxu0 }
 0x10c   :  { %v3565_v55 = vpop.f32.mrb[7].mxu0 }
 0x10f   :  { %v505_v56 = vpop.f32.mrb[8].mxu0 }
 0x110   :  { %v2739_v57 = vpop.f32.mrb[9].mxu0 }
 0x112   :  { %v3143_v18 = vpop.eup %3142 }
 0x113   :  { %315 = vrot.lane.b32.xlu0 %v3143_v18, %s3350_s26 }
 0x114   :  { %v3145_v20 = vpop.eup %3144 }
 0x115   :  { %v309_v21 = vadd.f32 1.0, %v3145_v20 }
 0x117   :  { %3146 = vrcp.f32 %v309_v21 }
 0x121   :  { %v3147_v22 = vpop.eup %3146 }
 0x122   :  { %v313_v25 = vmul.f32 0.0, %v3147_v22 }
 0x185   :  { %v316_v23 = vpop.permute.xlu0 %315 }
 0x186   :  { %v318_v24 = vmul.f32 %v3147_v22, %v316_v23 }
 0x188   :  { %320 = vrot.lane.b32.xlu0 %v318_v24, %s3351_s27 }
 0x1fa   :  { %v321_v26 = vpop.permute.xlu0 %320 }
 0x1fb   :  { %v3479_v27 = vadd.f32 %v321_v26, %v313_v25 }
 0x1fd   :  { %3148 = vtanh.f32 %v3479_v27 }
 0x207   :  { %v3149_v38 = vpop.eup %3148 }
 0x208   :  { %326 = vrot.lane.b32.xlu1 %v3149_v38, %s3350_s26  ;;  %v183_v38 = vadd.f32 %v3474_v12, %v3527_v44 }
 0x27a   :  { %v327_v41 = vpop.permute.xlu1 %326 }
 0x27b   :  { %v329_v42 = vmul.f32 %v3147_v22, %v327_v41 }
 0x27d   :  { %332 = vrot.lane.b32.xlu1 %v329_v42, %s3351_s27 }
 0x2ef   :  { %v333_v52 = vpop.permute.xlu1 %332 }
 0x2f0   :  { %2727 = vmatmul.mubr.msk.f32.vlgmr.msra.gmra.mrb[2].mxu1 %vm231_vm3, %v333_v52 }
 0x2f1   :  { %3002 = vmatpush3.bf16.msra.mxu1 %v3539_v49  ;;  %2748 = vmatprep.mubr.msk.f32.mxu1 %vm3348_vm0, %v3349_v1 }
 0x2f2   :  { %3003 = vmatprep.subr.bf16.mxu1 %v3347_v0 }
 0x2f5   :  { %3005 = vmatpush3.bf16.msra.mxu1 %v3549_v53 }
 0x2f6   :  { %3012 = vmatprep.subr.bf16.mxu1 %v3347_v0 }
 0x2f8   :  { %2749 = vmatmul.mubr.msk.f32.vlgmr.msra.gmra.mrb[4].mxu1 %vm231_vm3, %v333_v52 }
 0x2f9   :  { %3014 = vmatpush3.bf16.msra.mxu1 %v3485_v31  ;;  %2770 = vmatprep.mubr.msk.f32.mxu1 %vm3348_vm0, %v3349_v1 }
 0x2fa   :  { %3015 = vmatprep.subr.bf16.mxu1 %v3347_v0 }
 0x2fd   :  { %3017 = vmatpush3.bf16.msra.mxu1 %v3500_v37 }
 0x2fe   :  { %3024 = vmatprep.subr.bf16.mxu1 %v3347_v0 }
 0x3c3   :  { %v402_v59 = vpop.f32.mrb[2].mxu1 }
 0x3c4   :  { %v406_v60 = vadd.f32 %v402_v59, %v178_v58  ;;  %v2728_v61 = vpop.f32.mrb[3].mxu1 }
 0x3c6   :  { %3150 = vtanh.f32 %v406_v60  ;;  %v2521_v8 = vmul.f32 -1.442695, %v406_v60 }
 0x3cb   :  { %v575_v63 = vpop.f32.mrb[4].mxu1 }
 0x3cc   :  { %v576_v2 = vadd.f32 %v575_v63, %v505_v56  ;;  %v2750_v3 = vpop.f32.mrb[5].mxu1 }
 0x3ce   :  { %v579_v4 = vadd.f32 %v3572_v62, %v576_v2 }
 0x3d0   :  { %v3151_v6 = vpop.eup %3150  ;;  %3152 = vtanh.f32 %v579_v4  ;;  %v2523_v9 = vmul.f32 -1.442695, %v579_v4 }
 0x3d1   :  { %416 = vrot.lane.b32.xlu0 %v3151_v6, %s3350_s26  ;;  %3154 = vpow2.f32 %v2521_v8 }
 0x3d2   :  { %3156 = vpow2.f32 %v2523_v9 }
 0x3da   :  { %v3153_v7 = vpop.eup %3152 }
 0x3db   :  { %589 = vrot.lane.b32.xlu1 %v3153_v7, %s3350_s26  ;;  %v3155_v11 = vpop.eup %3154 }
 0x3dc   :  { %v410_v13 = vadd.f32 1.0, %v3155_v11  ;;  %v3157_v14 = vpop.eup %3156 }
 0x3dd   :  { %v583_v15 = vadd.f32 1.0, %v3157_v14 }
 0x3de   :  { %3158 = vrcp.f32 %v410_v13 }
 0x3df   :  { %3160 = vrcp.f32 %v583_v15 }
 0x3e8   :  { %v3159_v16 = vpop.eup %3158 }
 0x3e9   :  { %v3161_v19 = vpop.eup %3160  ;;  %v414_v22 = vmul.f32 %v3159_v16, %v3479_v27 }
 0x3ea   :  { %v587_v25 = vmul.f32 0.0, %v3161_v19 }
 0x443   :  { %v417_v17 = vpop.permute.xlu0 %416 }
 0x444   :  { %v419_v18 = vmul.f32 %v3159_v16, %v417_v17 }
 0x446   :  { %421 = vrot.lane.b32.xlu0 %v419_v18, %s3351_s27 }
 0x44d   :  { %v590_v20 = vpop.permute.xlu1 %589 }
 0x44e   :  { %v592_v21 = vmul.f32 %v3161_v19, %v590_v20 }
 0x450   :  { %594 = vrot.lane.b32.xlu1 %v592_v21, %s3351_s27 }
 0x4b8   :  { %v422_v23 = vpop.permute.xlu0 %421 }
 0x4b9   :  { %v3580_v24 = vadd.f32 %v422_v23, %v414_v22 }
 0x4bb   :  { %3162 = vtanh.f32 %v3580_v24 }
 0x4c2   :  { %v595_v26 = vpop.permute.xlu1 %594 }
 0x4c3   :  { %v3583_v28 = vadd.f32 %v595_v26, %v587_v25  ;;  %v188_v25 = vadd.f32 %v3525_v43, %v3474_v12 }
 0x4c5   :  { %v3163_v29 = vpop.eup %3162  ;;  %3164 = vtanh.f32 %v3583_v28 }
 0x4c6   :  { %427 = vrot.lane.b32.xlu0 %v3163_v29, %s3350_s26 }
 0x4cf   :  { %v3165_v30 = vpop.eup %3164 }
 0x4d0   :  { %600 = vrot.lane.b32.xlu1 %v3165_v30, %s3350_s26 }
 0x538   :  { %v428_v32 = vpop.permute.xlu0 %427 }
 0x539   :  { %v430_v33 = vmul.f32 %v3159_v16, %v428_v32 }
 0x53b   :  { %606 = vrot.lane.b32.xlu0 %v430_v33, %s3351_s27 }
 0x542   :  { %v601_v27 = vpop.permute.xlu1 %600 }
 0x543   :  { %v603_v34 = vmul.f32 %v3161_v19, %v601_v27 }
 0x545   :  { %706 = vrot.lane.b32.xlu1 %v603_v34, %s3351_s27 }
 0x5ad   :  { %v607_v35 = vpop.permute.xlu0 %606 }
 0x5ae   :  { %2760 = vmatmul.mubr.msk.f32.vlgmr.msra.gmra.mrb[10].mxu0 %vm231_vm3, %v607_v35 }
 0x5af   :  { %3020 = vmatpush3.bf16.msra.mxu0 %v3539_v49  ;;  %2781 = vmatprep.mubr.msk.f32.mxu0 %vm3348_vm0, %v3349_v1 }
 0x5b0   :  { %3021 = vmatprep.subr.bf16.mxu0 %v3347_v0 }
 0x5b3   :  { %3023 = vmatpush3.bf16.msra.mxu0 %v3549_v53 }
 0x5b4   :  { %3030 = vmatprep.subr.bf16.mxu0 %v3347_v0 }
 0x5b6   :  { %2782 = vmatmul.mubr.msk.f32.vlgmr.msra.gmra.mrb[12].mxu0 %vm231_vm3, %v607_v35 }
 0x5b7   :  { %v707_v36 = vpop.permute.xlu1 %706  ;;  %3032 = vmatpush3.bf16.msra.mxu0 %v3485_v31  ;;  %2803 = vmatprep.mubr.msk.f32.mxu0 %vm3348_vm0, %v3349_v1 }
 0x5b8   :  { %2771 = vmatmul.mubr.msk.f32.vlgmr.msra.gmra.mrb[6].mxu1 %vm231_vm3, %v707_v36  ;;  %3033 = vmatprep.subr.bf16.mxu0 %v3347_v0 }
 0x5b9   :  { %3026 = vmatpush3.bf16.msra.mxu1 %v3439_v5  ;;  %2792 = vmatprep.mubr.msk.f32.mxu1 %vm3348_vm0, %v3349_v1 }
 0x5ba   :  { %3027 = vmatprep.subr.bf16.mxu1 %v3347_v0 }
 0x5bb   :  { %3035 = vmatpush3.bf16.msra.mxu0 %v3500_v37 }
 0x5bc   :  { %3042 = vmatprep.subr.bf16.mxu0 %v3347_v0 }
 0x5bd   :  { %3029 = vmatpush3.bf16.msra.mxu1 %v3456_v10 }
 0x5be   :  { %3036 = vmatprep.subr.bf16.mxu1 %v3347_v0 }
 0x681   :  { %v676_v39 = vpop.f32.mrb[10].mxu0 }
 0x682   :  { %v680_v40 = vadd.f32 %v676_v39, %v183_v38  ;;  %v2761_v41 = vpop.f32.mrb[11].mxu0 }
 0x684   :  { %3166 = vtanh.f32 %v680_v40  ;;  %v2525_v58 = vmul.f32 -1.442695, %v680_v40 }
 0x689   :  { %v846_v42 = vpop.f32.mrb[12].mxu0 }
 0x68a   :  { %v2783_v47 = vpop.f32.mrb[13].mxu0 }
 0x68b   :  { %v776_v48 = vpop.f32.mrb[6].mxu1 }
 0x68c   :  { %v847_v50 = vadd.f32 %v846_v42, %v776_v48  ;;  %v2772_v51 = vpop.f32.mrb[7].mxu1 }
 0x68e   :  { %v3167_v52 = vpop.eup %3166  ;;  %v850_v56 = vadd.f32 %v3572_v62, %v847_v50 }
 0x68f   :  { %690 = vrot.lane.b32.xlu0 %v3167_v52, %s3350_s26 }
 0x690   :  { %3168 = vtanh.f32 %v850_v56  ;;  %v2528_v44 = vmul.f32 -1.442695, %v850_v56 }
 0x691   :  { %3170 = vpow2.f32 %v2525_v58 }
 0x692   :  { %3172 = vpow2.f32 %v2528_v44 }
 0x69a   :  { %v3169_v57 = vpop.eup %3168 }
 0x69b   :  { %860 = vrot.lane.b32.xlu1 %v3169_v57, %s3350_s26  ;;  %v3171_v59 = vpop.eup %3170 }
 0x69c   :  { %v684_v60 = vadd.f32 1.0, %v3171_v59  ;;  %v3173_v61 = vpop.eup %3172 }
 0x69d   :  { %v854_v63 = vadd.f32 1.0, %v3173_v61 }
 0x69e   :  { %3174 = vrcp.f32 %v684_v60 }
 0x69f   :  { %3176 = vrcp.f32 %v854_v63 }
 0x6a8   :  { %v3175_v2 = vpop.eup %3174 }
 0x6a9   :  { %v3177_v6 = vpop.eup %3176  ;;  %v688_v9 = vmul.f32 %v3175_v2, %v3580_v24 }
 0x6aa   :  { %v858_v14 = vmul.f32 %v3177_v6, %v3583_v28 }
 0x701   :  { %v691_v3 = vpop.permute.xlu0 %690 }
 0x702   :  { %v693_v4 = vmul.f32 %v3175_v2, %v691_v3 }
 0x704   :  { %695 = vrot.lane.b32.xlu0 %v693_v4, %s3351_s27 }
 0x70d   :  { %v861_v7 = vpop.permute.xlu1 %860 }
 0x70e   :  { %v863_v8 = vmul.f32 %v3177_v6, %v861_v7 }
 0x710   :  { %865 = vrot.lane.b32.xlu1 %v863_v8, %s3351_s27 }
 0x776   :  { %v696_v11 = vpop.permute.xlu0 %695 }
 0x777   :  { %v3619_v13 = vadd.f32 %v696_v11, %v688_v9 }
 0x779   :  { %3178 = vtanh.f32 %v3619_v13 }
 0x782   :  { %v866_v15 = vpop.permute.xlu1 %865 }
 0x783   :  { %v3179_v16 = vpop.eup %3178  ;;  %v3623_v17 = vadd.f32 %v866_v15, %v858_v14 }
 0x784   :  { %701 = vrot.lane.b32.xlu0 %v3179_v16, %s3350_s26 }
 0x785   :  { %3180 = vtanh.f32 %v3623_v17 }
 0x78f   :  { %v3181_v18 = vpop.eup %3180 }
 0x790   :  { %871 = vrot.lane.b32.xlu1 %v3181_v18, %s3350_s26 }
 0x7f6   :  { %v702_v19 = vpop.permute.xlu0 %701 }
 0x7f7   :  { %v704_v20 = vmul.f32 %v3175_v2, %v702_v19 }
 0x7f9   :  { %877 = vrot.lane.b32.xlu0 %v704_v20, %s3351_s27 }
 0x802   :  { %v872_v21 = vpop.permute.xlu1 %871 }
 0x803   :  { %v874_v22 = vmul.f32 %v3177_v6, %v872_v21 }
 0x805   :  { %977 = vrot.lane.b32.xlu1 %v874_v22, %s3351_s27 }
 0x86b   :  { %v878_v23 = vpop.permute.xlu0 %877 }
 0x86c   :  { %2793 = vmatmul.mubr.msk.f32.vlgmr.msra.gmra.mrb[8].mxu1 %vm231_vm3, %v878_v23 }
 0x86d   :  { %3038 = vmatpush3.bf16.msra.mxu1 %v3539_v49  ;;  %2814 = vmatprep.mubr.msk.f32.mxu1 %vm3348_vm0, %v3349_v1 }
 0x86e   :  { %3039 = vmatprep.subr.bf16.mxu1 %v3347_v0 }
 0x871   :  { %3041 = vmatpush3.bf16.msra.mxu1 %v3549_v53 }
 0x872   :  { %3048 = vmatprep.subr.bf16.mxu1 %v3347_v0 }
 0x874   :  { %2815 = vmatmul.mubr.msk.f32.vlgmr.msra.gmra.mrb[10].mxu1 %vm231_vm3, %v878_v23 }
 0x875   :  { %3050 = vmatpush3.bf16.msra.mxu1 %v3485_v31  ;;  %2836 = vmatprep.mubr.msk.f32.mxu1 %vm3348_vm0, %v3349_v1 }
 0x876   :  { %3051 = vmatprep.subr.bf16.mxu1 %v3347_v0 }
 0x877   :  { %v978_v24 = vpop.permute.xlu1 %977 }
 0x878   :  { %2804 = vmatmul.mubr.msk.f32.vlgmr.msra.gmra.mrb[14].mxu0 %vm231_vm3, %v978_v24 }
 0x879   :  { %3044 = vmatpush3.bf16.msra.mxu0 %v3439_v5  ;;  %2825 = vmatprep.mubr.msk.f32.mxu0 %vm3348_vm0, %v3349_v1 }
 0x87a   :  { %3045 = vmatprep.subr.bf16.mxu0 %v3347_v0  ;;  %3053 = vmatpush3.bf16.msra.mxu1 %v3500_v37 }
 0x87b   :  { %3060 = vmatprep.subr.bf16.mxu1 %v3347_v0 }
 0x87d   :  { %3047 = vmatpush3.bf16.msra.mxu0 %v3456_v10 }
 0x87e   :  { %3054 = vmatprep.subr.bf16.mxu0 %v3347_v0 }
 0x93f   :  { %v947_v26 = vpop.f32.mrb[8].mxu1 }
 0x940   :  { %v951_v28 = vadd.f32 %v947_v26, %v188_v25  ;;  %v2794_v29 = vpop.f32.mrb[9].mxu1 }
 0x942   :  { %3182 = vtanh.f32 %v951_v28  ;;  %v2530_v39 = vmul.f32 -1.442695, %v951_v28 }
 0x947   :  { %v1117_v30 = vpop.f32.mrb[10].mxu1 }
 0x948   :  { %v2816_v32 = vpop.f32.mrb[11].mxu1 }
 0x94b   :  { %v1047_v33 = vpop.f32.mrb[14].mxu0 }
 0x94c   :  { %v3183_v27 = vpop.eup %3182  ;;  %v1118_v34 = vadd.f32 %v1117_v30, %v1047_v33  ;;  %v2805_v35 = vpop.f32.mrb[15].mxu0 }
 0x94d   :  { %961 = vrot.lane.b32.xlu0 %v3183_v27, %s3350_s26 }
 0x94e   :  { %v1121_v36 = vadd.f32 %v3572_v62, %v1118_v34 }
 0x950   :  { %3184 = vtanh.f32 %v1121_v36  ;;  %v2533_v40 = vmul.f32 -1.442695, %v1121_v36 }
 0x951   :  { %3186 = vpow2.f32 %v2530_v39 }
 0x952   :  { %3188 = vpow2.f32 %v2533_v40 }
 0x95a   :  { %v3185_v38 = vpop.eup %3184 }
 0x95b   :  { %1131 = vrot.lane.b32.xlu1 %v3185_v38, %s3350_s26  ;;  %v3187_v43 = vpop.eup %3186 }
 0x95c   :  { %v955_v41 = vadd.f32 1.0, %v3187_v43  ;;  %v3189_v42 = vpop.eup %3188 }
 0x95d   :  { %v1125_v48 = vadd.f32 1.0, %v3189_v42 }
 0x95e   :  { %3190 = vrcp.f32 %v955_v41 }
 0x95f   :  { %3192 = vrcp.f32 %v1125_v48 }
 0x968   :  { %v3191_v47 = vpop.eup %3190 }
 0x969   :  { %v3193_v52 = vpop.eup %3192  ;;  %v959_v58 = vmul.f32 %v3191_v47, %v3619_v13  ;;  %v193_v13 = vadd.f32 %v3474_v12, %v3531_v46 }
 0x96a   :  { %v1129_v61 = vmul.f32 %v3193_v52, %v3623_v17 }
 0x9bf   :  { %v962_v50 = vpop.permute.xlu0 %961 }
 0x9c0   :  { %v964_v51 = vmul.f32 %v3191_v47, %v962_v50 }
 0x9c2   :  { %966 = vrot.lane.b32.xlu0 %v964_v51, %s3351_s27 }
 0x9cd   :  { %v1132_v56 = vpop.permute.xlu1 %1131 }
 0x9ce   :  { %v1134_v57 = vmul.f32 %v3193_v52, %v1132_v56 }
 0x9d0   :  { %1136 = vrot.lane.b32.xlu1 %v1134_v57, %s3351_s27 }
 0xa34   :  { %v967_v44 = vpop.permute.xlu0 %966 }
 0xa35   :  { %v3659_v59 = vadd.f32 %v967_v44, %v959_v58  ;;  %v198_v44 = vadd.f32 %v3529_v45, %v3474_v12 }
 0xa37   :  { %3194 = vtanh.f32 %v3659_v59 }
 0xa41   :  { %v3195_v60 = vpop.eup %3194 }
 0xa42   :  { %v1137_v63 = vpop.permute.xlu1 %1136  ;;  %972 = vrot.lane.b32.xlu0 %v3195_v60, %s3350_s26 }
 0xa43   :  { %v3664_v2 = vadd.f32 %v1137_v63, %v1129_v61 }
 0xa45   :  { %3196 = vtanh.f32 %v3664_v2 }
 0xa4f   :  { %v3197_v3 = vpop.eup %3196 }
 0xa50   :  { %1142 = vrot.lane.b32.xlu1 %v3197_v3, %s3350_s26 }
 0xab4   :  { %v973_v4 = vpop.permute.xlu0 %972 }
 0xab5   :  { %v975_v6 = vmul.f32 %v3191_v47, %v973_v4 }
 0xab7   :  { %1148 = vrot.lane.b32.xlu0 %v975_v6, %s3351_s27 }
 0xac2   :  { %v1143_v7 = vpop.permute.xlu1 %1142 }
 0xac3   :  { %v1145_v8 = vmul.f32 %v3193_v52, %v1143_v7 }
 0xac5   :  { %1248 = vrot.lane.b32.xlu1 %v1145_v8, %s3351_s27 }
 0xb29   :  { %v1149_v9 = vpop.permute.xlu0 %1148 }
 0xb2a   :  { %2826 = vmatmul.mubr.msk.f32.vlgmr.msra.gmra.mrb[16].mxu0 %vm231_vm3, %v1149_v9 }
 0xb2b   :  { %3056 = vmatpush3.bf16.msra.mxu0 %v3539_v49  ;;  %2847 = vmatprep.mubr.msk.f32.mxu0 %vm3348_vm0, %v3349_v1 }
 0xb2c   :  { %3057 = vmatprep.subr.bf16.mxu0 %v3347_v0 }
 0xb2f   :  { %3059 = vmatpush3.bf16.msra.mxu0 %v3549_v53 }
 0xb30   :  { %3066 = vmatprep.subr.bf16.mxu0 %v3347_v0 }
 0xb32   :  { %2848 = vmatmul.mubr.msk.f32.vlgmr.msra.gmra.mrb[18].mxu0 %vm231_vm3, %v1149_v9 }
 0xb33   :  { %3068 = vmatpush3.bf16.msra.mxu0 %v3485_v31  ;;  %2869 = vmatprep.mubr.msk.f32.mxu0 %vm3348_vm0, %v3349_v1 }
 0xb34   :  { %3069 = vmatprep.subr.bf16.mxu0 %v3347_v0 }
 0xb37   :  { %v1249_v11 = vpop.permute.xlu1 %1248  ;;  %3071 = vmatpush3.bf16.msra.mxu0 %v3500_v37 }
 0xb38   :  { %2837 = vmatmul.mubr.msk.f32.vlgmr.msra.gmra.mrb[12].mxu1 %vm231_vm3, %v1249_v11  ;;  %3078 = vmatprep.subr.bf16.mxu0 %v3347_v0 }
 0xb39   :  { %3062 = vmatpush3.bf16.msra.mxu1 %v3439_v5  ;;  %2858 = vmatprep.mubr.msk.f32.mxu1 %vm3348_vm0, %v3349_v1 }
 0xb3a   :  { %3063 = vmatprep.subr.bf16.mxu1 %v3347_v0 }
 0xb3d   :  { %3065 = vmatpush3.bf16.msra.mxu1 %v3456_v10 }
 0xb3e   :  { %3072 = vmatprep.subr.bf16.mxu1 %v3347_v0 }
 0xbfd   :  { %v1218_v14 = vpop.f32.mrb[16].mxu0 }
 0xbfe   :  { %v1222_v15 = vadd.f32 %v1218_v14, %v193_v13  ;;  %v2827_v16 = vpop.f32.mrb[17].mxu0 }
 0xc00   :  { %3198 = vtanh.f32 %v1222_v15  ;;  %v2535_v25 = vmul.f32 -1.442695, %v1222_v15 }
 0xc05   :  { %v1388_v17 = vpop.f32.mrb[18].mxu0 }
 0xc06   :  { %v2849_v18 = vpop.f32.mrb[19].mxu0 }
 0xc0a   :  { %v3199_v19 = vpop.eup %3198 }
 0xc0b   :  { %v1318_v20 = vpop.f32.mrb[12].mxu1  ;;  %1232 = vrot.lane.b32.xlu0 %v3199_v19, %s3350_s26 }
 0xc0c   :  { %v1389_v21 = vadd.f32 %v1388_v17, %v1318_v20  ;;  %v2838_v22 = vpop.f32.mrb[13].mxu1 }
 0xc0e   :  { %v1392_v23 = vadd.f32 %v3572_v62, %v1389_v21 }
 0xc10   :  { %3200 = vtanh.f32 %v1392_v23  ;;  %v2538_v26 = vmul.f32 -1.442695, %v1392_v23 }
 0xc11   :  { %3202 = vpow2.f32 %v2535_v25 }
 0xc12   :  { %3204 = vpow2.f32 %v2538_v26 }
 0xc1a   :  { %v3201_v24 = vpop.eup %3200 }
 0xc1b   :  { %1402 = vrot.lane.b32.xlu1 %v3201_v24, %s3350_s26  ;;  %v3203_v46 = vpop.eup %3202 }
 0xc1c   :  { %v1226_v28 = vadd.f32 1.0, %v3203_v46  ;;  %v3205_v29 = vpop.eup %3204 }
 0xc1d   :  { %v1396_v27 = vadd.f32 1.0, %v3205_v29 }
 0xc1e   :  { %3206 = vrcp.f32 %v1226_v28 }
 0xc1f   :  { %3208 = vrcp.f32 %v1396_v27 }
 0xc28   :  { %v3207_v30 = vpop.eup %3206 }
 0xc29   :  { %v3209_v34 = vpop.eup %3208  ;;  %v1230_v38 = vmul.f32 %v3207_v30, %v3659_v59 }
 0xc2a   :  { %v1400_v41 = vmul.f32 %v3209_v34, %v3664_v2 }
 0xc7d   :  { %v1233_v32 = vpop.permute.xlu0 %1232 }
 0xc7e   :  { %v1235_v33 = vmul.f32 %v3207_v30, %v1233_v32 }
 0xc80   :  { %1237 = vrot.lane.b32.xlu0 %v1235_v33, %s3351_s27 }
 0xc8d   :  { %v1403_v35 = vpop.permute.xlu1 %1402 }
 0xc8e   :  { %v1405_v36 = vmul.f32 %v3209_v34, %v1403_v35 }
 0xc90   :  { %1407 = vrot.lane.b32.xlu1 %v1405_v36, %s3351_s27 }
 0xcf2   :  { %v1238_v39 = vpop.permute.xlu0 %1237 }
 0xcf3   :  { %v3699_v43 = vadd.f32 %v1238_v39, %v1230_v38  ;;  %v203_v38 = vadd.f32 %v3474_v12, %v3565_v55 }
 0xcf5   :  { %3210 = vtanh.f32 %v3699_v43 }
 0xcff   :  { %v3211_v40 = vpop.eup %3210 }
 0xd00   :  { %1243 = vrot.lane.b32.xlu0 %v3211_v40, %s3350_s26 }
 0xd02   :  { %v1408_v42 = vpop.permute.xlu1 %1407 }
 0xd03   :  { %v3704_v47 = vadd.f32 %v1408_v42, %v1400_v41 }
 0xd05   :  { %3212 = vtanh.f32 %v3704_v47 }
 0xd0f   :  { %v3213_v48 = vpop.eup %3212 }
 0xd10   :  { %1413 = vrot.lane.b32.xlu1 %v3213_v48, %s3350_s26 }
 0xd72   :  { %v1244_v50 = vpop.permute.xlu0 %1243 }
 0xd73   :  { %v1246_v51 = vmul.f32 %v3207_v30, %v1244_v50 }
 0xd75   :  { %1419 = vrot.lane.b32.xlu0 %v1246_v51, %s3351_s27 }
 0xd82   :  { %v1414_v52 = vpop.permute.xlu1 %1413 }
 0xd83   :  { %v1416_v56 = vmul.f32 %v3209_v34, %v1414_v52 }
 0xd85   :  { %1519 = vrot.lane.b32.xlu1 %v1416_v56, %s3351_s27 }
 0xde7   :  { %v1420_v57 = vpop.permute.xlu0 %1419 }
 0xde8   :  { %2859 = vmatmul.mubr.msk.f32.vlgmr.msra.gmra.mrb[14].mxu1 %vm231_vm3, %v1420_v57 }
 0xde9   :  { %3074 = vmatpush3.bf16.msra.mxu1 %v3539_v49  ;;  %2880 = vmatprep.mubr.msk.f32.mxu1 %vm3348_vm0, %v3349_v1 }
 0xdea   :  { %3075 = vmatprep.subr.bf16.mxu1 %v3347_v0 }
 0xded   :  { %3077 = vmatpush3.bf16.msra.mxu1 %v3549_v53 }
 0xdee   :  { %3084 = vmatprep.subr.bf16.mxu1 %v3347_v0 }
 0xdf0   :  { %2881 = vmatmul.mubr.msk.f32.vlgmr.msra.gmra.mrb[16].mxu1 %vm231_vm3, %v1420_v57 }
 0xdf1   :  { %3086 = vmatpush3.bf16.msra.mxu1 %v3485_v31  ;;  %2902 = vmatprep.mubr.msk.f32.mxu1 %vm3348_vm0, %v3349_v1 }
 0xdf2   :  { %3087 = vmatprep.subr.bf16.mxu1 %v3347_v0 }
 0xdf5   :  { %3089 = vmatpush3.bf16.msra.mxu1 %v3500_v37 }
 0xdf6   :  { %3096 = vmatprep.subr.bf16.mxu1 %v3347_v0 }
 0xdf7   :  { %v1520_v58 = vpop.permute.xlu1 %1519 }
 0xdf8   :  { %2870 = vmatmul.mubr.msk.f32.vlgmr.msra.gmra.mrb[20].mxu0 %vm231_vm3, %v1520_v58 }
 0xdf9   :  { %3080 = vmatpush3.bf16.msra.mxu0 %v3439_v5  ;;  %2891 = vmatprep.mubr.msk.f32.mxu0 %vm3348_vm0, %v3349_v1 }
 0xdfa   :  { %3081 = vmatprep.subr.bf16.mxu0 %v3347_v0 }
 0xdfd   :  { %3083 = vmatpush3.bf16.msra.mxu0 %v3456_v10 }
 0xdfe   :  { %3090 = vmatprep.subr.bf16.mxu0 %v3347_v0 }
 0xebb   :  { %v1489_v59 = vpop.f32.mrb[14].mxu1 }
 0xebc   :  { %v1493_v60 = vadd.f32 %v1489_v59, %v198_v44  ;;  %v2860_v61 = vpop.f32.mrb[15].mxu1 }
 0xebe   :  { %3214 = vtanh.f32 %v1493_v60  ;;  %v2540_v11 = vmul.f32 -1.442695, %v1493_v60 }
 0xec3   :  { %v1659_v63 = vpop.f32.mrb[16].mxu1 }
 0xec4   :  { %v2882_v2 = vpop.f32.mrb[17].mxu1 }
 0xec8   :  { %v3215_v3 = vpop.eup %3214 }
 0xec9   :  { %1503 = vrot.lane.b32.xlu0 %v3215_v3, %s3350_s26 }
 0xecb   :  { %v1589_v4 = vpop.f32.mrb[20].mxu0 }
 0xecc   :  { %v1660_v6 = vadd.f32 %v1659_v63, %v1589_v4  ;;  %v2871_v7 = vpop.f32.mrb[21].mxu0 }
 0xece   :  { %v1663_v8 = vadd.f32 %v3572_v62, %v1660_v6 }
 0xed0   :  { %3216 = vtanh.f32 %v1663_v8  ;;  %v2543_v14 = vmul.f32 -1.442695, %v1663_v8 }
 0xed1   :  { %3218 = vpow2.f32 %v2540_v11 }
 0xeda   :  { %v3217_v9 = vpop.eup %3216 }
 0xedb   :  { %1673 = vrot.lane.b32.xlu1 %v3217_v9, %s3350_s26  ;;  %v3219_v45 = vpop.eup %3218 }
 0xedc   :  { %v1497_v13 = vadd.f32 1.0, %v3219_v45 }
 0xede   :  { %3220 = vrcp.f32 %v1497_v13 }
 0xedf   :  { %3222 = vpow2.f32 %v2543_v14 }
 0xee8   :  { %v3221_v15 = vpop.eup %3220 }
 0xee9   :  { %v3223_v17 = vpop.eup %3222  ;;  %v1501_v23 = vmul.f32 %v3221_v15, %v3699_v43 }
 0xeea   :  { %v1667_v19 = vadd.f32 1.0, %v3223_v17 }
 0xeec   :  { %3224 = vrcp.f32 %v1667_v19 }
 0xef6   :  { %v3225_v20 = vpop.eup %3224 }
 0xef7   :  { %v1671_v26 = vmul.f32 %v3225_v20, %v3704_v47 }
 0xf3b   :  { %v1504_v16 = vpop.permute.xlu0 %1503 }
 0xf3c   :  { %v1506_v18 = vmul.f32 %v3221_v15, %v1504_v16 }
 0xf3e   :  { %1508 = vrot.lane.b32.xlu0 %v1506_v18, %s3351_s27 }
 0xf4d   :  { %v1674_v21 = vpop.permute.xlu1 %1673 }
 0xf4e   :  { %v1676_v22 = vmul.f32 %v3225_v20, %v1674_v21 }
 0xf50   :  { %1678 = vrot.lane.b32.xlu1 %v1676_v22, %s3351_s27 }
 0xfb0   :  { %v1509_v24 = vpop.permute.xlu0 %1508 }
 0xfb1   :  { %v3739_v25 = vadd.f32 %v1509_v24, %v1501_v23 }
 0xfb3   :  { %3226 = vtanh.f32 %v3739_v25 }
 0xfbd   :  { %v3227_v46 = vpop.eup %3226 }
 0xfbe   :  { %1514 = vrot.lane.b32.xlu0 %v3227_v46, %s3350_s26 }
 0xfc2   :  { %v1679_v28 = vpop.permute.xlu1 %1678 }
 0xfc3   :  { %v3744_v29 = vadd.f32 %v1679_v28, %v1671_v26 }
 0xfc5   :  { %3228 = vtanh.f32 %v3744_v29 }
 0xfcf   :  { %v3229_v30 = vpop.eup %3228 }
 0xfd0   :  { %1684 = vrot.lane.b32.xlu1 %v3229_v30, %s3350_s26 }
0x1030   :  { %v1515_v32 = vpop.permute.xlu0 %1514 }
0x1031   :  { %v1517_v33 = vmul.f32 %v3221_v15, %v1515_v32 }
0x1033   :  { %1690 = vrot.lane.b32.xlu0 %v1517_v33, %s3351_s27 }
0x1042   :  { %v1685_v27 = vpop.permute.xlu1 %1684 }
0x1043   :  { %v1687_v34 = vmul.f32 %v3225_v20, %v1685_v27 }
0x1045   :  { %1790 = vrot.lane.b32.xlu1 %v1687_v34, %s3351_s27 }
0x10a5   :  { %v1691_v35 = vpop.permute.xlu0 %1690 }
0x10a6   :  { %2892 = vmatmul.mubr.msk.f32.vlgmr.msra.gmra.mrb[22].mxu0 %vm231_vm3, %v1691_v35 }
0x10a7   :  { %3092 = vmatpush3.bf16.msra.mxu0 %v3539_v49  ;;  %2913 = vmatprep.mubr.msk.f32.mxu0 %vm3348_vm0, %v3349_v1 }
0x10a8   :  { %3093 = vmatprep.subr.bf16.mxu0 %v3347_v0 }
0x10ab   :  { %3095 = vmatpush3.bf16.msra.mxu0 %v3549_v53 }
0x10ac   :  { %3102 = vmatprep.subr.bf16.mxu0 %v3347_v0 }
0x10ae   :  { %2914 = vmatmul.mubr.msk.f32.vlgmr.msra.gmra.mrb[24].mxu0 %vm231_vm3, %v1691_v35 }
0x10af   :  { %3104 = vmatpush3.bf16.msra.mxu0 %v3485_v31  ;;  %2935 = vmatprep.mubr.msk.f32.mxu0 %vm3348_vm0, %v3349_v1 }
0x10b0   :  { %3105 = vmatprep.subr.bf16.mxu0 %v3347_v0 }
0x10b3   :  { %3107 = vmatpush3.bf16.msra.mxu0 %v3500_v37 }
0x10b4   :  { %3114 = vmatprep.subr.bf16.mxu0 %v3347_v0 }
0x10b7   :  { %v1791_v36 = vpop.permute.xlu1 %1790 }
0x10b8   :  { %2903 = vmatmul.mubr.msk.f32.vlgmr.msra.gmra.mrb[18].mxu1 %vm231_vm3, %v1791_v36 }
0x10b9   :  { %3098 = vmatpush3.bf16.msra.mxu1 %v3439_v5  ;;  %2924 = vmatprep.mubr.msk.f32.mxu1 %vm3348_vm0, %v3349_v1 }
0x10ba   :  { %3099 = vmatprep.subr.bf16.mxu1 %v3347_v0 }
0x10bd   :  { %3101 = vmatpush3.bf16.msra.mxu1 %v3456_v10 }
0x10be   :  { %3108 = vmatprep.subr.bf16.mxu1 %v3347_v0 }
0x1179   :  { %v1760_v39 = vpop.f32.mrb[22].mxu0 }
0x117a   :  { %v1764_v43 = vadd.f32 %v1760_v39, %v203_v38  ;;  %v2893_v40 = vpop.f32.mrb[23].mxu0 }
0x117c   :  { %3230 = vtanh.f32 %v1764_v43  ;;  %v2545_v52 = vmul.f32 -1.442695, %v1764_v43 }
0x1181   :  { %v1930_v41 = vpop.f32.mrb[24].mxu0 }
0x1182   :  { %v2915_v42 = vpop.f32.mrb[25].mxu0 }
0x1186   :  { %v3231_v47 = vpop.eup %3230 }
0x1187   :  { %1774 = vrot.lane.b32.xlu0 %v3231_v47, %s3350_s26 }
0x118b   :  { %v1860_v5 = vpop.f32.mrb[18].mxu1 }
0x118c   :  { %v1931_v48 = vadd.f32 %v1930_v41, %v1860_v5  ;;  %v2904_v50 = vpop.f32.mrb[19].mxu1 }
0x118e   :  { %v1934_v51 = vadd.f32 %v3572_v62, %v1931_v48 }
0x1190   :  { %3232 = vtanh.f32 %v1934_v51  ;;  %v2548_v56 = vmul.f32 -1.442695, %v1934_v51 }
0x1191   :  { %3234 = vpow2.f32 %v2545_v52 }
0x119a   :  { %v3233_v10 = vpop.eup %3232 }
0x119b   :  { %1944 = vrot.lane.b32.xlu1 %v3233_v10, %s3350_s26  ;;  %v3235_v12 = vpop.eup %3234 }
0x119c   :  { %v1768_v55 = vadd.f32 1.0, %v3235_v12 }
0x119e   :  { %3236 = vrcp.f32 %v1768_v55 }
0x119f   :  { %3238 = vpow2.f32 %v2548_v56 }
0x11a8   :  { %v3237_v57 = vpop.eup %3236 }
0x11a9   :  { %v3239_v59 = vpop.eup %3238  ;;  %v1772_v3 = vmul.f32 %v3237_v57, %v3739_v25 }
0x11aa   :  { %v1938_v60 = vadd.f32 1.0, %v3239_v59 }
0x11ac   :  { %3240 = vrcp.f32 %v1938_v60 }
0x11b6   :  { %v3241_v61 = vpop.eup %3240 }
0x11b7   :  { %v1942_v8 = vmul.f32 %v3241_v61, %v3744_v29 }
0x11f9   :  { %v1775_v58 = vpop.permute.xlu0 %1774 }
0x11fa   :  { %v1777_v44 = vmul.f32 %v3237_v57, %v1775_v58 }
0x11fc   :  { %1779 = vrot.lane.b32.xlu0 %v1777_v44, %s3351_s27 }
0x120d   :  { %v1945_v63 = vpop.permute.xlu1 %1944 }
0x120e   :  { %v1947_v2 = vmul.f32 %v3241_v61, %v1945_v63 }
0x1210   :  { %1949 = vrot.lane.b32.xlu1 %v1947_v2, %s3351_s27 }
0x126e   :  { %v1780_v4 = vpop.permute.xlu0 %1779 }
0x126f   :  { %v3779_v6 = vadd.f32 %v1780_v4, %v1772_v3 }
0x1271   :  { %3242 = vtanh.f32 %v3779_v6 }
0x127b   :  { %v3243_v7 = vpop.eup %3242 }
0x127c   :  { %1785 = vrot.lane.b32.xlu0 %v3243_v7, %s3350_s26 }
0x1282   :  { %v1950_v9 = vpop.permute.xlu1 %1949 }
0x1283   :  { %v3784_v11 = vadd.f32 %v1950_v9, %v1942_v8 }
0x1285   :  { %3244 = vtanh.f32 %v3784_v11 }
0x128f   :  { %v3245_v45 = vpop.eup %3244 }
0x1290   :  { %1955 = vrot.lane.b32.xlu1 %v3245_v45, %s3350_s26  ;;  %v2405_v45 = vld [vmem:[#allocation6] sm:$0xff] }
0x12ee   :  { %v1786_v13 = vpop.permute.xlu0 %1785 }
0x12ef   :  { %v1788_v14 = vmul.f32 %v3237_v57, %v1786_v13  ;;  %v2407_v13 = vld [vmem:[#allocation6 + $0x10] sm:$0xff] }
0x12f1   :  { %1961 = vrot.lane.b32.xlu0 %v1788_v14, %s3351_s27 }
0x1302   :  { %v1956_v15 = vpop.permute.xlu1 %1955 }
0x1303   :  { %v1958_v16 = vmul.f32 %v3241_v61, %v1956_v15  ;;  %v2408_v15 = vld [vmem:[#allocation6 + $0x18] sm:$0xff] }
0x1305   :  { %2061 = vrot.lane.b32.xlu1 %v1958_v16, %s3351_s27  ;;  %v3130_v16 = vpack.c.bf16 %v2408_v15, %v2407_v13 }
0x1363   :  { %v1962_v17 = vpop.permute.xlu0 %1961 }
0x1364   :  { %2925 = vmatmul.mubr.msk.f32.vlgmr.msra.gmra.mrb[20].mxu1 %vm231_vm3, %v1962_v17 }
0x1365   :  { %3110 = vmatpush3.bf16.msra.mxu1 %v3539_v49  ;;  %2946 = vmatprep.mubr.msk.f32.mxu1 %vm3348_vm0, %v3349_v1 }
0x1366   :  { %3111 = vmatprep.subr.bf16.mxu1 %v3347_v0 }
0x1369   :  { %3113 = vmatpush3.bf16.msra.mxu1 %v3549_v53 }
0x136a   :  { %3120 = vmatprep.subr.bf16.mxu1 %v3347_v0 }
0x136c   :  { %2947 = vmatmul.mubr.msk.f32.vlgmr.msra.gmra.mrb[22].mxu1 %vm231_vm3, %v1962_v17 }
0x136d   :  { %3122 = vmatpush3.bf16.msra.mxu1 %v3539_v49  ;;  %2968 = vmatprep.mubr.msk.f32.mxu1 %vm3348_vm0, %v3349_v1  ;;  %v3270_v49 = vld [vmem:[%s3854_s3] ss:$0 sm:$0xff] }
0x136e   :  { %3123 = vmatprep.subr.bf16.mxu1 %v3347_v0 }
0x1371   :  { %3125 = vmatpush3.bf16.msra.mxu1 %v3549_v53  ;;  %v208_v53 = vadd.f32 %v3270_v49, %v3563_v54 }
0x1377   :  { %v2062_v18 = vpop.permute.xlu1 %2061 }
0x1378   :  { %2936 = vmatmul.mubr.msk.f32.vlgmr.msra.gmra.mrb[26].mxu0 %vm231_vm3, %v2062_v18 }
0x1379   :  { %3116 = vmatpush3.bf16.msra.mxu0 %v3485_v31  ;;  %2957 = vmatprep.mubr.msk.f32.mxu0 %vm3348_vm0, %v3349_v1 }
0x137a   :  { %3117 = vmatprep.subr.bf16.mxu0 %v3347_v0 }
0x137d   :  { %3119 = vmatpush3.bf16.msra.mxu0 %v3500_v37 }
0x137e   :  { %3126 = vmatprep.subr.bf16.mxu0 %v3347_v0 }
0x1437   :  { %v2031_v19 = vpop.f32.mrb[20].mxu1 }
0x1438   :  { %v2035_v20 = vadd.f32 %v2031_v19, %v208_v53  ;;  %v2926_v21 = vpop.f32.mrb[21].mxu1  ;;  %v2557_v19 = vld [vmem:[%s3859_s8] ss:$0 sm:$0xff] }
0x143a   :  { %3246 = vtanh.f32 %v2035_v20  ;;  %v2550_v28 = vmul.f32 -1.442695, %v2035_v20 }
0x143f   :  { %v2201_v31 = vpop.f32.mrb[22].mxu1 }
0x1440   :  { %v2948_v22 = vpop.f32.mrb[23].mxu1 }
0x1444   :  { %v3247_v23 = vpop.eup %3246 }
0x1445   :  { %2045 = vrot.lane.b32.xlu0 %v3247_v23, %s3350_s26 }
0x144b   :  { %v2131_v24 = vpop.f32.mrb[26].mxu0 }
0x144c   :  { %v2202_v25 = vadd.f32 %v2201_v31, %v2131_v24  ;;  %v2937_v37 = vpop.f32.mrb[27].mxu0 }
0x144e   :  { %v2205_v46 = vadd.f32 %v3572_v62, %v2202_v25 }
0x1450   :  { %3248 = vtanh.f32 %v2205_v46  ;;  %v2553_v30 = vmul.f32 -1.442695, %v2205_v46 }
0x1451   :  { %3250 = vpow2.f32 %v2550_v28 }
0x145a   :  { %v3249_v26 = vpop.eup %3248 }
0x145b   :  { %2215 = vrot.lane.b32.xlu1 %v3249_v26, %s3350_s26  ;;  %v3251_v54 = vpop.eup %3250 }
0x145c   :  { %v2039_v29 = vadd.f32 1.0, %v3251_v54 }
0x145e   :  { %3252 = vrcp.f32 %v2039_v29 }
0x145f   :  { %3254 = vpow2.f32 %v2553_v30 }
0x1468   :  { %v3253_v32 = vpop.eup %3252 }
0x1469   :  { %v3255_v34 = vpop.eup %3254  ;;  %v2043_v43 = vmul.f32 %v3253_v32, %v3779_v6 }
0x146a   :  { %v2209_v35 = vadd.f32 1.0, %v3255_v34 }
0x146c   :  { %3256 = vrcp.f32 %v2209_v35 }
0x1476   :  { %v3257_v36 = vpop.eup %3256 }
0x1477   :  { %v2213_v47 = vmul.f32 %v3257_v36, %v3784_v11 }
0x14b7   :  { %v2046_v33 = vpop.permute.xlu0 %2045 }
0x14b8   :  { %v2048_v27 = vmul.f32 %v3253_v32, %v2046_v33 }
0x14ba   :  { %2050 = vrot.lane.b32.xlu0 %v2048_v27, %s3351_s27 }
0x14cd   :  { %v2216_v38 = vpop.permute.xlu1 %2215 }
0x14ce   :  { %v2218_v39 = vmul.f32 %v3257_v36, %v2216_v38 }
0x14d0   :  { %2220 = vrot.lane.b32.xlu1 %v2218_v39, %s3351_s27 }
0x152c   :  { %v2051_v40 = vpop.permute.xlu0 %2050 }
0x152d   :  { %v2053_v41 = vadd.f32 %v2051_v40, %v2043_v43 }
0x152f   :  { %3258 = vtanh.f32 %v2053_v41 }
0x1539   :  { %v3259_v42 = vpop.eup %3258 }
0x153a   :  { %2056 = vrot.lane.b32.xlu0 %v3259_v42, %s3350_s26 }
0x1542   :  { %v2221_v5 = vpop.permute.xlu1 %2220 }
0x1543   :  { %v2223_v48 = vadd.f32 %v2221_v5, %v2213_v47 }
0x1545   :  { %3260 = vtanh.f32 %v2223_v48 }
0x154f   :  { %v3261_v50 = vpop.eup %3260 }
0x1550   :  { %2226 = vrot.lane.b32.xlu1 %v3261_v50, %s3350_s26 }
0x15ac   :  { %v2057_v51 = vpop.permute.xlu0 %2056 }
0x15ad   :  { %v2059_v10 = vmul.f32 %v3253_v32, %v2057_v51 }
0x15af   :  { %2306 = vrot.lane.b32.xlu1 %v2059_v10, %s3351_s27 }
0x15c2   :  { %v2227_v52 = vpop.permute.xlu1 %2226 }
0x15c3   :  { %v2229_v12 = vmul.f32 %v3257_v36, %v2227_v52 }
0x15c5   :  { %2231 = vrot.lane.b32.xlu0 %v2229_v12, %s3351_s27 }
0x1621   :  { %v2307_v55 = vpop.permute.xlu1 %2306 }
0x1622   :  { %2969 = vmatmul.mubr.msk.f32.vlgmr.msra.gmra.mrb[24].mxu1 %vm231_vm3, %v2307_v55 }
0x1637   :  { %v2232_v56 = vpop.permute.xlu0 %2231 }
0x1638   :  { %2958 = vmatmul.mubr.msk.f32.vlgmr.msra.gmra.mrb[28].mxu0 %vm231_vm3, %v2232_v56 }
0x1639   :  { %2979 = vmatprep.mubr.msk.f32.mxu0 %vm3348_vm0, %v3349_v1 }
0x16f5   :  { %v2376_v57 = vpop.f32.mrb[24].mxu1 }
0x16f6   :  { %v2970_v58 = vpop.f32.mrb[25].mxu1 }
0x170b   :  { %v2301_v44 = vpop.f32.mrb[28].mxu0 }
0x170c   :  { %v2377_v59 = vadd.f32 %v2376_v57, %v2301_v44  ;;  %v2959_v60 = vpop.f32.mrb[29].mxu0 }
0x170e   :  { %v2380_v61 = vadd.f32 %v3572_v62, %v2377_v59  ;;  %v2406_v62 = vld [vmem:[#allocation6 + $0x8] sm:$0xff] }
0x170f   :  { %v3127_v14 = vpack.c.bf16 %v2406_v62, %v2405_v45 }
0x1710   :  { %3262 = vtanh.f32 %v2380_v61  ;;  %v2556_v2 = vmul.f32 -1.442695, %v2380_v61 }
0x1711   :  { %3128 = vmatpush3.bf16.msra.mxu0 %v3127_v14 }
0x1712   :  { %3264 = vpow2.f32 %v2556_v2  ;;  %3129 = vmatprep.subr.bf16.mxu0 %v3347_v0 }
0x1715   :  { %3131 = vmatpush3.bf16.msra.mxu0 %v3130_v16 }
0x171a   :  { %v3263_v63 = vpop.eup %3262 }
0x171b   :  { %2390 = vrot.lane.b32.xlu0 %v3263_v63, %s3350_s26 }
0x171c   :  { %v3265_v3 = vpop.eup %3264 }
0x171d   :  { %v2384_v4 = vadd.f32 1.0, %v3265_v3 }
0x171f   :  { %3266 = vrcp.f32 %v2384_v4 }
0x1729   :  { %v3267_v6 = vpop.eup %3266 }
0x172a   :  { %v2388_v1 = vmul.f32 %v3267_v6, %v2223_v48 }
0x178d   :  { %v2391_v7 = vpop.permute.xlu0 %2390 }
0x178e   :  { %v2393_v8 = vmul.f32 %v3267_v6, %v2391_v7 }
0x1790   :  { %2395 = vrot.lane.b32.xlu1 %v2393_v8, %s3351_s27 }
0x1802   :  { %v2396_v9 = vpop.permute.xlu1 %2395 }
0x1803   :  { %v2398_v11 = vadd.f32 %v2396_v9, %v2388_v1 }
0x1805   :  { %3268 = vtanh.f32 %v2398_v11 }
0x180f   :  { %v3269_v17 = vpop.eup %3268 }
0x1810   :  { %2401 = vrot.lane.b32.xlu0 %v3269_v17, %s3350_s26 }
0x1882   :  { %v2402_v18 = vpop.permute.xlu0 %2401 }
0x1883   :  { %v2404_v49 = vmul.f32 %v3267_v6, %v2402_v18 }
0x1885   :  { %2417 = vrot.lane.b32.xlu1 %v2404_v49, %s3351_s27 }
0x18f7   :  { %v2418_v53 = vpop.permute.xlu1 %2417 }
0x18f8   :  { %2980 = vmatmul.mubr.msk.f32.vlgmr.msra.gmra.mrb[30].mxu0 %vm231_vm3, %v2418_v53 }
0x19cb   :  { %v2487_v20 = vpop.f32.mrb[30].mxu0 }
0x19cc   :  { %v2488_v21 = vadd.f32 %v2557_v19, %v2487_v20  ;;  %v2981_v0 = vpop.f32.mrb[31].mxu0 }
0x19ce   :  { %2491 = vst [vmem:[#allocation8] sm:$0xff] %v2488_v21 }
0x19cf   :  { %3326 = shalt.err (!%p3323_p6)
}
0x19d0   :  { %s3327_s30 = scalar_lea.hbm %s3860_s9, 128 }
0x19d1   :  { %p3328_p7 = scmp.ne.s32.totalorder %s3860_s9, %s3327_s30  ;;  %p3331_p8 = scmp.lt.u32.totalorder %s3327_s30, %s3860_s9 }
0x19d3   :  { %p3333_p9 = pnand %p3331_p8, %p3328_p7 }
0x19d5   :  { %3336 = shalt.err (!%p3333_p9)
}
0x19d6   :  { %2501 = dma.vmem_to_hbm [thread:$0]  %s2499_s28, 128, %s3860_s9, [#allocation5]  }
0x19d7   :  { %3341 = dma.done.wait [#allocation5], 128  }
0x19d8   :  { %3342 = vsyncadd [#allocation5], 4294967168 }
0x19d9   :  { %2505 = vsyncpa [#allocation4], 1 }
0x19da   :  { %2506 = vsyncpa [#allocation7], 1 }
0x19db   :  { %2507 = vsyncpa [#allocation5], 1 }

</bundles_post_ra>
